<compile_context>
chip_gen: v5e
topology: v5e:2x2
jax: 0.10.0
libtpu: 0.0.40
codegen_flags: <defaults>
</compile_context>

<pallas_src>
import numpy as np
import jax
import jax.numpy as jnp
from jax.experimental import pallas as pl
from jax.experimental.pallas import tpu as pltpu

INPUT_SIZE = 130          # len(feat_cols)
HIDDEN = 256
OUTPUT_SIZE = 5           # len(resp_cols)
EPS = 1e-5
NEG_SLOPE = 0.01

IN_PAD = 256              # pad 130 feature lanes -> 256 (zero padded)
OUT_PAD = 128             # pad 5 output lanes   -> 128 (zero padded)
TILE_B_MAX = 512          # MXU M-fill; per-tile VMEM stays well under limits


def _leaky(v):
    return jnp.where(v >= 0, v, NEG_SLOPE * v)


def _round_up(a, m):
    return (a + m - 1) // m * m


# ----------------------------------------------------------------------------
# Kernel: one batch tile per grid step.  All BN scale/shifts are pre-folded.
# ----------------------------------------------------------------------------
def spikenet_kernel(
    x_ref,                                   # [TB, IN_PAD]  f32
    w1_ref, w2a_ref, w2b_ref,                # folded weights (f32 or bf16)
    w3a_ref, w3b_ref, w4a_ref, w4b_ref,
    bias_ref,                                # [8, IN_PAD] f32: rows 0..3 = b1..b4
    out_ref,                                 # [TB, OUT_PAD] f32
):
    f32 = jnp.float32
    dot_dt = w1_ref.dtype                    # MXU input dtype (bf16 or f32)

    b1 = bias_ref[0:1, :]                    # [1, 256]
    b2 = bias_ref[1:2, :]
    b3 = bias_ref[2:3, :]
    b4 = bias_ref[3:4, :OUT_PAD]             # [1, 128]

    x = x_ref[...].astype(dot_dt)            # BN0 already folded into W1/W2a/b*

    # dense1 (BN0, BN1 folded) -> LeakyReLU      (dropout == identity)
    x1 = _leaky(jnp.dot(x, w1_ref[...], preferred_element_type=f32) + b1)
    x1d = x1.astype(dot_dt)

    # dense2(cat[x0, x1]) == x @ W2a' + x1 @ W2b'  (BN2 folded) -> LeakyReLU
    x2 = _leaky(jnp.dot(x, w2a_ref[...], preferred_element_type=f32)
                + jnp.dot(x1d, w2b_ref[...], preferred_element_type=f32) + b2)
    x2d = x2.astype(dot_dt)

    # dense3(cat[x1, x2])  (BN3 folded) -> LeakyReLU
    x3 = _leaky(jnp.dot(x1d, w3a_ref[...], preferred_element_type=f32)
                + jnp.dot(x2d, w3b_ref[...], preferred_element_type=f32) + b3)

    # dense4(cat[x2, x3])
    out_ref[...] = (jnp.dot(x2d, w4a_ref[...], preferred_element_type=f32)
                    + jnp.dot(x3.astype(dot_dt), w4b_ref[...],
                              preferred_element_type=f32)
                    + b4)


# ----------------------------------------------------------------------------
# Parameter init (shapes from SpikeNetC.__init__), BN folding, operand prep.
# ----------------------------------------------------------------------------
def init_params(key):
    ks = jax.random.split(key, 8)

    def linear(k, fan_in, fan_out):
        # torch Linear stores weight [out, in]; we build W = weight.T -> [in, out]
        lim = 1.0 / np.sqrt(fan_in)
        kw, kb = jax.random.split(k)
        w = jax.random.uniform(kw, (fan_in, fan_out), jnp.float32, -lim, lim)
        b = jax.random.uniform(kb, (fan_out,), jnp.float32, -lim, lim)
        return w, b

    def bnorm(k, n):
        kg, kb, km, kv = jax.random.split(k, 4)
        gamma = 1.0 + 0.1 * jax.random.normal(kg, (n,), jnp.float32)
        beta = 0.1 * jax.random.normal(kb, (n,), jnp.float32)
        rmean = 0.1 * jax.random.normal(km, (n,), jnp.float32)
        rvar = 1.0 + 0.1 * jax.random.uniform(kv, (n,), jnp.float32)
        return gamma, beta, rmean, rvar

    p = {}
    p['bn0'] = bnorm(ks[0], INPUT_SIZE)
    p['w1'], p['b1'] = linear(ks[1], INPUT_SIZE, HIDDEN)
    p['bn1'] = bnorm(ks[2], HIDDEN)
    p['w2'], p['b2'] = linear(ks[3], INPUT_SIZE + HIDDEN, HIDDEN)
    p['bn2'] = bnorm(ks[4], HIDDEN)
    p['w3'], p['b3'] = linear(ks[5], HIDDEN + HIDDEN, HIDDEN)
    p['bn3'] = bnorm(ks[6], HIDDEN)
    p['w4'], p['b4'] = linear(ks[7], HIDDEN + HIDDEN, OUTPUT_SIZE)
    return p


def _fold_bn(bn):
    gamma, beta, rmean, rvar = bn
    s = gamma / jnp.sqrt(rvar + EPS)
    t = beta - rmean * s
    return s, t


def _pad_to(a, shape):
    pads = [(0, shape[i] - a.shape[i]) for i in range(a.ndim)]
    return jnp.pad(a, pads)


def prepare_operands(params, weights_dtype=jnp.float32):
    """Fold BN into weights/biases, split cat-weights, pad to TPU lanes."""
    f32 = jnp.float32
    s0, t0 = _fold_bn(params['bn0'])
    s1, t1 = _fold_bn(params['bn1'])
    s2, t2 = _fold_bn(params['bn2'])
    s3, t3 = _fold_bn(params['bn3'])

    w1 = params['w1']                       # [130, 256]
    w2a = params['w2'][:INPUT_SIZE]         # [130, 256]
    w2b = params['w2'][INPUT_SIZE:]         # [256, 256]
    w3a = params['w3'][:HIDDEN]             # [256, 256]
    w3b = params['w3'][HIDDEN:]             # [256, 256]
    w4a = params['w4'][:HIDDEN]             # [256, 5]
    w4b = params['w4'][HIDDEN:]             # [256, 5]

    # Exact algebraic fold of (x*s+t) pre-scales and (h*s+t) post-scales.
    w1f = s0[:, None] * w1 * s1[None, :]
    b1f = (t0 @ w1 + params['b1']) * s1 + t1
    w2af = s0[:, None] * w2a * s2[None, :]
    w2bf = w2b * s2[None, :]
    b2f = (t0 @ w2a + params['b2']) * s2 + t2
    w3af = w3a * s3[None, :]
    w3bf = w3b * s3[None, :]
    b3f = params['b3'] * s3 + t3
    b4 = params['b4']

    wdt = weights_dtype
    W1 = _pad_to(w1f, (IN_PAD, HIDDEN)).astype(wdt)
    W2a = _pad_to(w2af, (IN_PAD, HIDDEN)).astype(wdt)
    W2b = w2bf.astype(wdt)
    W3a = w3af.astype(wdt)
    W3b = w3bf.astype(wdt)
    W4a = _pad_to(w4a, (HIDDEN, OUT_PAD)).astype(wdt)
    W4b = _pad_to(w4b, (HIDDEN, OUT_PAD)).astype(wdt)

    biases = jnp.zeros((8, IN_PAD), f32)        # single packed bias operand
    biases = biases.at[0, :HIDDEN].set(b1f)
    biases = biases.at[1, :HIDDEN].set(b2f)
    biases = biases.at[2, :HIDDEN].set(b3f)
    biases = biases.at[3, :OUTPUT_SIZE].set(b4)

    return (W1, W2a, W2b, W3a, W3b, W4a, W4b, biases)


# ----------------------------------------------------------------------------
# Pallas wrapper.
# ----------------------------------------------------------------------------
def spikenet_forward_pallas(x, params, *, weights_dtype=jnp.float32, tile_b=None):
    f32 = jnp.float32
    B = x.shape[0]
    ops = prepare_operands(params, weights_dtype)
    W1, W2a, W2b, W3a, W3b, W4a, W4b, biases = ops

    # Batch tile: multiple of 8 sublanes, capped for VMEM headroom.
    if tile_b is None:
        tile_b = min(TILE_B_MAX, _round_up(B, 8))
    tile_b = _round_up(tile_b, 8)
    pB = _round_up(B, tile_b)                    # pad B -> unmasked stores
    grid = (pB // tile_b,)

    x_p = _pad_to(x.astype(f32), (pB, IN_PAD))   # [pB, IN_PAD]

    def resident(shape):
        # Constant index_map: block never changes -> stays resident in VMEM.
        return pl.BlockSpec(shape, lambda i: (0, 0))

    in_specs = [
        pl.BlockSpec((tile_b, IN_PAD), lambda i: (i, 0)),    # x (pipelined)
        resident((IN_PAD, HIDDEN)),                          # W1
        resident((IN_PAD, HIDDEN)),                          # W2a
        resident((HIDDEN, HIDDEN)),                          # W2b
        resident((HIDDEN, HIDDEN)),                          # W3a
        resident((HIDDEN, HIDDEN)),                          # W3b
        resident((HIDDEN, OUT_PAD)),                         # W4a
        resident((HIDDEN, OUT_PAD)),                         # W4b
        resident((8, IN_PAD)),                               # packed biases
    ]
    out_spec = pl.BlockSpec((tile_b, OUT_PAD), lambda i: (i, 0))

    weight_elems = 2 * IN_PAD * HIDDEN + 3 * HIDDEN * HIDDEN + 2 * HIDDEN * OUT_PAD
    flops = 2 * pB * weight_elems
    bytes_accessed = (pB * (IN_PAD + OUT_PAD) * 4
                      + weight_elems * int(jnp.dtype(weights_dtype).itemsize)
                      + 8 * IN_PAD * 4)
    cost = pl.CostEstimate(flops=int(flops), transcendentals=0,
                           bytes_accessed=int(bytes_accessed))

    out = pl.pallas_call(
        spikenet_kernel,
        out_shape=jax.ShapeDtypeStruct((pB, OUT_PAD), f32),
        grid=grid,
        in_specs=in_specs,
        out_specs=out_spec,
        compiler_params=pltpu.CompilerParams(
            dimension_semantics=("parallel",)),   # megacore sharding on v7x
        cost_estimate=cost,
    )(x_p, W1, W2a, W2b, W3a, W3b, W4a, W4b, biases)

    return out[:B, :OUTPUT_SIZE]


# ----------------------------------------------------------------------------
# References.
# ----------------------------------------------------------------------------
def spikenet_forward_ref(x, params):
    """Faithful module semantics (BN applied separately, explicit concat)."""
    def bn(v, b):
        s, t = _fold_bn(b)
        return v * s + t

    x0 = bn(x, params['bn0'])
    x1 = _leaky(bn(x0 @ params['w1'] + params['b1'], params['bn1']))
    x2 = _leaky(bn(jnp.concatenate([x0, x1], 1) @ params['w2'] + params['b2'],
                   params['bn2']))
    x3 = _leaky(bn(jnp.concatenate([x1, x2], 1) @ params['w3'] + params['b3'],
                   params['bn3']))
    return jnp.concatenate([x2, x3], 1) @ params['w4'] + params['b4']


def spikenet_forward_folded_ref(x, ops):
    """Pure-JAX mirror of the kernel math (same folded/padded operands)."""
    W1, W2a, W2b, W3a, W3b, W4a, W4b, biases = ops
    f32 = jnp.float32
    dt = W1.dtype
    xp = _pad_to(x.astype(f32), (x.shape[0], IN_PAD))
    b1, b2, b3 = biases[0:1, :], biases[1:2, :], biases[2:3, :]
    b4 = biases[3:4, :OUT_PAD]
    xd = xp.astype(dt)
    x1 = _leaky(jnp.dot(xd, W1, preferred_element_type=f32) + b1)
    x1d = x1.astype(dt)
    x2 = _leaky(jnp.dot(xd, W2a, preferred_element_type=f32)
                + jnp.dot(x1d, W2b, preferred_element_type=f32) + b2)
    x2d = x2.astype(dt)
    x3 = _leaky(jnp.dot(x1d, W3a, preferred_element_type=f32)
                + jnp.dot(x2d, W3b, preferred_element_type=f32) + b3)
    out = (jnp.dot(x2d, W4a, preferred_element_type=f32)
           + jnp.dot(x3.astype(dt), W4b, preferred_element_type=f32) + b4)
    return out[:, :OUTPUT_SIZE]


if __name__ == "__main__":
    key = jax.random.PRNGKey(0)
    k_params, k_x = jax.random.split(key)
    params = init_params(k_params)

    # ---- small-shape check, single tile, f32 weights ----
    B = 16
    x = jax.random.normal(k_x, (B, INPUT_SIZE), jnp.float32)
    out = jax.block_until_ready(spikenet_forward_pallas(x, params))
    assert out.shape == (B, OUTPUT_SIZE), out.shape

    ref_module = jax.block_until_ready(spikenet_forward_ref(x, params))
    ref_folded = jax.block_until_ready(
        spikenet_forward_folded_ref(x, prepare_operands(params)))

    # Tight check vs the identical-operand folded reference (Pallas mechanics).
    np.testing.assert_allclose(np.asarray(out), np.asarray(ref_folded),
                               rtol=1e-4, atol=1e-4)
    # Semantics check vs the faithful module reference (BN-fold algebra).
    np.testing.assert_allclose(np.asarray(out), np.asarray(ref_module),
                               rtol=2e-2, atol=2e-2)

    # ---- multi-tile grid + batch-padding path (forced small tile) ----
    B2 = 200
    x2 = jax.random.normal(jax.random.PRNGKey(1), (B2, INPUT_SIZE), jnp.float32)
    out2 = jax.block_until_ready(spikenet_forward_pallas(x2, params, tile_b=64))
    ref2 = jax.block_until_ready(
        spikenet_forward_folded_ref(x2, prepare_operands(params)))
    np.testing.assert_allclose(np.asarray(out2), np.asarray(ref2),
                               rtol=1e-4, atol=1e-4)

    # ---- bf16 weights (full-rate MXU on v6e/v7x), f32 accumulation ----
    out_bf16 = jax.block_until_ready(
        spikenet_forward_pallas(x, params, weights_dtype=jnp.bfloat16))
    ref_bf16 = jax.block_until_ready(
        spikenet_forward_folded_ref(x, prepare_operands(params, jnp.bfloat16)))
    # Same bf16 operands / f32 accumulation -> tight vs folded ref,
    # loose vs the f32 module reference (expected bf16 rounding only).
    np.testing.assert_allclose(np.asarray(out_bf16), np.asarray(ref_bf16),
                               rtol=2e-3, atol=2e-3)
    np.testing.assert_allclose(np.asarray(out_bf16), np.asarray(ref_module),
                               rtol=5e-2, atol=5e-2)

    print("KERNEL_OK")
</pallas_src>

<mosaic_0001>
module attributes {stable_mosaic.version = 11 : i64} {
  func.func @spikenet_kernel(%arg0: i32, %arg1: memref<16x256xf32, #tpu.memory_space<vmem>>, %arg2: memref<256x256xf32, #tpu.memory_space<vmem>>, %arg3: memref<256x256xf32, #tpu.memory_space<vmem>>, %arg4: memref<256x256xf32, #tpu.memory_space<vmem>>, %arg5: memref<256x256xf32, #tpu.memory_space<vmem>>, %arg6: memref<256x256xf32, #tpu.memory_space<vmem>>, %arg7: memref<256x128xf32, #tpu.memory_space<vmem>>, %arg8: memref<256x128xf32, #tpu.memory_space<vmem>>, %arg9: memref<8x256xf32, #tpu.memory_space<vmem>>, %arg10: memref<16x128xf32, #tpu.memory_space<vmem>>) attributes {dimension_semantics = [#tpu.dimension_semantics<parallel>], iteration_bounds = array<i64: 1>, scalar_prefetch = 0 : i64, scratch_operands = 0 : i64, tpu.core_type = #tpu.core_type<tc>, window_params = [{transform_indices = @transform_0, window_bounds = array<i64: 16, 256>}, {pipeline_mode = #tpu.pipeline_mode<synchronous>, transform_indices = @transform_1, window_bounds = array<i64: 256, 256>}, {pipeline_mode = #tpu.pipeline_mode<synchronous>, transform_indices = @transform_2, window_bounds = array<i64: 256, 256>}, {pipeline_mode = #tpu.pipeline_mode<synchronous>, transform_indices = @transform_3, window_bounds = array<i64: 256, 256>}, {pipeline_mode = #tpu.pipeline_mode<synchronous>, transform_indices = @transform_4, window_bounds = array<i64: 256, 256>}, {pipeline_mode = #tpu.pipeline_mode<synchronous>, transform_indices = @transform_5, window_bounds = array<i64: 256, 256>}, {pipeline_mode = #tpu.pipeline_mode<synchronous>, transform_indices = @transform_6, window_bounds = array<i64: 256, 128>}, {pipeline_mode = #tpu.pipeline_mode<synchronous>, transform_indices = @transform_7, window_bounds = array<i64: 256, 128>}, {pipeline_mode = #tpu.pipeline_mode<synchronous>, transform_indices = @transform_8, window_bounds = array<i64: 8, 256>}, {transform_indices = @transform_9, window_bounds = array<i64: 16, 128>}]} {
    %c0 = arith.constant 0 : index
    %c0_0 = arith.constant 0 : index
    %0 = vector.load %arg9[%c0, %c0_0] : memref<8x256xf32, #tpu.memory_space<vmem>>, vector<1x256xf32>
    %c1 = arith.constant 1 : index
    %c0_1 = arith.constant 0 : index
    %1 = vector.load %arg9[%c1, %c0_1] : memref<8x256xf32, #tpu.memory_space<vmem>>, vector<1x256xf32>
    %c2 = arith.constant 2 : index
    %c0_2 = arith.constant 0 : index
    %2 = vector.load %arg9[%c2, %c0_2] : memref<8x256xf32, #tpu.memory_space<vmem>>, vector<1x256xf32>
    %c3 = arith.constant 3 : index
    %c0_3 = arith.constant 0 : index
    %3 = vector.load %arg9[%c3, %c0_3] : memref<8x256xf32, #tpu.memory_space<vmem>>, vector<1x128xf32>
    %c0_4 = arith.constant 0 : index
    %c0_5 = arith.constant 0 : index
    %4 = vector.load %arg1[%c0_4, %c0_5] : memref<16x256xf32, #tpu.memory_space<vmem>>, vector<16x256xf32>
    %c0_6 = arith.constant 0 : index
    %c0_7 = arith.constant 0 : index
    %5 = vector.load %arg2[%c0_6, %c0_7] : memref<256x256xf32, #tpu.memory_space<vmem>>, vector<256x256xf32>
    %cst = arith.constant dense<0.000000e+00> : vector<16x256xf32>
    %6 = tpu.matmul %4, %5, %cst {dimension_numbers = #tpu.dot_dimension_numbers<[1], [0], [0], [1], [0, 0, 1, 1], [], []>} : vector<16x256xf32>, vector<256x256xf32>, vector<16x256xf32> -> vector<16x256xf32>
    %7 = vector.broadcast %0 : vector<1x256xf32> to vector<16x256xf32>
    %8 = arith.addf %6, %7 : vector<16x256xf32>
    %cst_8 = arith.constant 0.000000e+00 : f32
    %9 = vector.broadcast %cst_8 : f32 to vector<16x256xf32>
    %10 = arith.cmpf oge, %8, %9 : vector<16x256xf32>
    %cst_9 = arith.constant 0.00999999977 : f32
    %11 = vector.broadcast %cst_9 : f32 to vector<16x256xf32>
    %12 = arith.mulf %11, %8 : vector<16x256xf32>
    %13 = arith.select %10, %8, %12 : vector<16x256xi1>, vector<16x256xf32>
    %c0_10 = arith.constant 0 : index
    %c0_11 = arith.constant 0 : index
    %14 = vector.load %arg3[%c0_10, %c0_11] : memref<256x256xf32, #tpu.memory_space<vmem>>, vector<256x256xf32>
    %cst_12 = arith.constant dense<0.000000e+00> : vector<16x256xf32>
    %15 = tpu.matmul %4, %14, %cst_12 {dimension_numbers = #tpu.dot_dimension_numbers<[1], [0], [0], [1], [0, 0, 1, 1], [], []>} : vector<16x256xf32>, vector<256x256xf32>, vector<16x256xf32> -> vector<16x256xf32>
    %c0_13 = arith.constant 0 : index
    %c0_14 = arith.constant 0 : index
    %16 = vector.load %arg4[%c0_13, %c0_14] : memref<256x256xf32, #tpu.memory_space<vmem>>, vector<256x256xf32>
    %cst_15 = arith.constant dense<0.000000e+00> : vector<16x256xf32>
    %17 = tpu.matmul %13, %16, %cst_15 {dimension_numbers = #tpu.dot_dimension_numbers<[1], [0], [0], [1], [0, 0, 1, 1], [], []>} : vector<16x256xf32>, vector<256x256xf32>, vector<16x256xf32> -> vector<16x256xf32>
    %18 = arith.addf %15, %17 : vector<16x256xf32>
    %19 = vector.broadcast %1 : vector<1x256xf32> to vector<16x256xf32>
    %20 = arith.addf %18, %19 : vector<16x256xf32>
    %cst_16 = arith.constant 0.000000e+00 : f32
    %21 = vector.broadcast %cst_16 : f32 to vector<16x256xf32>
    %22 = arith.cmpf oge, %20, %21 : vector<16x256xf32>
    %cst_17 = arith.constant 0.00999999977 : f32
    %23 = vector.broadcast %cst_17 : f32 to vector<16x256xf32>
    %24 = arith.mulf %23, %20 : vector<16x256xf32>
    %25 = arith.select %22, %20, %24 : vector<16x256xi1>, vector<16x256xf32>
    %c0_18 = arith.constant 0 : index
    %c0_19 = arith.constant 0 : index
    %26 = vector.load %arg5[%c0_18, %c0_19] : memref<256x256xf32, #tpu.memory_space<vmem>>, vector<256x256xf32>
    %cst_20 = arith.constant dense<0.000000e+00> : vector<16x256xf32>
    %27 = tpu.matmul %13, %26, %cst_20 {dimension_numbers = #tpu.dot_dimension_numbers<[1], [0], [0], [1], [0, 0, 1, 1], [], []>} : vector<16x256xf32>, vector<256x256xf32>, vector<16x256xf32> -> vector<16x256xf32>
    %c0_21 = arith.constant 0 : index
    %c0_22 = arith.constant 0 : index
    %28 = vector.load %arg6[%c0_21, %c0_22] : memref<256x256xf32, #tpu.memory_space<vmem>>, vector<256x256xf32>
    %cst_23 = arith.constant dense<0.000000e+00> : vector<16x256xf32>
    %29 = tpu.matmul %25, %28, %cst_23 {dimension_numbers = #tpu.dot_dimension_numbers<[1], [0], [0], [1], [0, 0, 1, 1], [], []>} : vector<16x256xf32>, vector<256x256xf32>, vector<16x256xf32> -> vector<16x256xf32>
    %30 = arith.addf %27, %29 : vector<16x256xf32>
    %31 = vector.broadcast %2 : vector<1x256xf32> to vector<16x256xf32>
    %32 = arith.addf %30, %31 : vector<16x256xf32>
    %cst_24 = arith.constant 0.000000e+00 : f32
    %33 = vector.broadcast %cst_24 : f32 to vector<16x256xf32>
    %34 = arith.cmpf oge, %32, %33 : vector<16x256xf32>
    %cst_25 = arith.constant 0.00999999977 : f32
    %35 = vector.broadcast %cst_25 : f32 to vector<16x256xf32>
    %36 = arith.mulf %35, %32 : vector<16x256xf32>
    %37 = arith.select %34, %32, %36 : vector<16x256xi1>, vector<16x256xf32>
    %c0_26 = arith.constant 0 : index
    %c0_27 = arith.constant 0 : index
    %38 = vector.load %arg7[%c0_26, %c0_27] : memref<256x128xf32, #tpu.memory_space<vmem>>, vector<256x128xf32>
    %cst_28 = arith.constant dense<0.000000e+00> : vector<16x128xf32>
    %39 = tpu.matmul %25, %38, %cst_28 {dimension_numbers = #tpu.dot_dimension_numbers<[1], [0], [0], [1], [0, 0, 1, 1], [], []>} : vector<16x256xf32>, vector<256x128xf32>, vector<16x128xf32> -> vector<16x128xf32>
    %c0_29 = arith.constant 0 : index
    %c0_30 = arith.constant 0 : index
    %40 = vector.load %arg8[%c0_29, %c0_30] : memref<256x128xf32, #tpu.memory_space<vmem>>, vector<256x128xf32>
    %cst_31 = arith.constant dense<0.000000e+00> : vector<16x128xf32>
    %41 = tpu.matmul %37, %40, %cst_31 {dimension_numbers = #tpu.dot_dimension_numbers<[1], [0], [0], [1], [0, 0, 1, 1], [], []>} : vector<16x256xf32>, vector<256x128xf32>, vector<16x128xf32> -> vector<16x128xf32>
    %42 = arith.addf %39, %41 : vector<16x128xf32>
    %43 = vector.broadcast %3 : vector<1x128xf32> to vector<16x128xf32>
    %44 = arith.addf %42, %43 : vector<16x128xf32>
    %c0_32 = arith.constant 0 : index
    %c0_33 = arith.constant 0 : index
    %45 = vector.load %arg10[%c0_32, %c0_33] : memref<16x128xf32, #tpu.memory_space<vmem>>, vector<16x128xf32>
    tpu.vector_store %arg10[%c0_32, %c0_33], %44 {strides = array<i32>} : memref<16x128xf32, #tpu.memory_space<vmem>>, vector<16x128xf32>,
    return
  }
  func.func @transform_0(%arg0: i32) -> (i32, i32) {
    %c0_i32 = arith.constant 0 : i32
    %c0_i32_0 = arith.constant 0 : i32
    return %arg0, %c0_i32 : i32, i32
  }
  func.func @transform_1(%arg0: i32) -> (i32, i32) {
    %c0_i32 = arith.constant 0 : i32
    %c0_i32_0 = arith.constant 0 : i32
    %c0_i32_1 = arith.constant 0 : i32
    return %c0_i32, %c0_i32_0 : i32, i32
  }
  func.func @transform_2(%arg0: i32) -> (i32, i32) {
    %c0_i32 = arith.constant 0 : i32
    %c0_i32_0 = arith.constant 0 : i32
    %c0_i32_1 = arith.constant 0 : i32
    return %c0_i32, %c0_i32_0 : i32, i32
  }
  func.func @transform_3(%arg0: i32) -> (i32, i32) {
    %c0_i32 = arith.constant 0 : i32
    %c0_i32_0 = arith.constant 0 : i32
    %c0_i32_1 = arith.constant 0 : i32
    return %c0_i32, %c0_i32_0 : i32, i32
  }
  func.func @transform_4(%arg0: i32) -> (i32, i32) {
    %c0_i32 = arith.constant 0 : i32
    %c0_i32_0 = arith.constant 0 : i32
    %c0_i32_1 = arith.constant 0 : i32
    return %c0_i32, %c0_i32_0 : i32, i32
  }
  func.func @transform_5(%arg0: i32) -> (i32, i32) {
    %c0_i32 = arith.constant 0 : i32
    %c0_i32_0 = arith.constant 0 : i32
    %c0_i32_1 = arith.constant 0 : i32
    return %c0_i32, %c0_i32_0 : i32, i32
  }
  func.func @transform_6(%arg0: i32) -> (i32, i32) {
    %c0_i32 = arith.constant 0 : i32
    %c0_i32_0 = arith.constant 0 : i32
    %c0_i32_1 = arith.constant 0 : i32
    return %c0_i32, %c0_i32_0 : i32, i32
  }
  func.func @transform_7(%arg0: i32) -> (i32, i32) {
    %c0_i32 = arith.constant 0 : i32
    %c0_i32_0 = arith.constant 0 : i32
    %c0_i32_1 = arith.constant 0 : i32
    return %c0_i32, %c0_i32_0 : i32, i32
  }
  func.func @transform_8(%arg0: i32) -> (i32, i32) {
    %c0_i32 = arith.constant 0 : i32
    %c0_i32_0 = arith.constant 0 : i32
    %c0_i32_1 = arith.constant 0 : i32
    return %c0_i32, %c0_i32_0 : i32, i32
  }
  func.func @transform_9(%arg0: i32) -> (i32, i32) {
    %c0_i32 = arith.constant 0 : i32
    %c0_i32_0 = arith.constant 0 : i32
    return %arg0, %c0_i32 : i32, i32
  }
}

</mosaic_0001>

<bundles_post_ra>
// kernel: tpu_custom_call.1
= control target key start
LH: loop header
LB: loop body
LE: loop exit
PB: predicated region body
PF: predicated region fallthrough
CT: control target
= control target key end

     0   :  { %14 = vsyncpa [#allocation3], 0  ;;  %s1653_s0 = inlined_call_operand.hbm [shape: f32[16,256], index: 0, kind: input, shape index: {}]   ;;  %s1654_s1 = inlined_call_operand.hbm [shape: f32[256,256], index: 1, kind: input, shape index: {}]   ;;  %s1655_s2 = inlined_call_operand.hbm [shape: f32[256,256], index: 2, kind: input, shape index: {}]   ;;  %s1656_s3 = inlined_call_operand.hbm [shape: f32[256,256], index: 3, kind: input, shape index: {}]   ;;  %s1657_s4 = inlined_call_operand.hbm [shape: f32[256,256], index: 4, kind: input, shape index: {}]   ;;  %s1658_s5 = inlined_call_operand.hbm [shape: f32[256,256], index: 5, kind: input, shape index: {}]   ;;  %s1659_s6 = inlined_call_operand.hbm [shape: f32[256,128], index: 6, kind: input, shape index: {}]   ;;  %s1660_s7 = inlined_call_operand.hbm [shape: f32[256,128], index: 7, kind: input, shape index: {}]   ;;  %s1661_s8 = inlined_call_operand.hbm [shape: f32[8,256], index: 8, kind: input, shape index: {}]   ;;  %s1662_s9 = inlined_call_operand.hbm [shape: f32[16,128], index: 9, kind: output, shape index: {}]  }
   0x1   :  { %15 = vsyncpa [#allocation6], 0 }
   0x2   :  { %16 = vsyncpa [#allocation9], 0 }
   0x3   :  { %17 = vsyncpa [#allocation12], 0 }
   0x4   :  { %18 = vsyncpa [#allocation15], 0 }
   0x5   :  { %19 = vsyncpa [#allocation4], 0  ;;  %s37_s11 = sshll.u32 %s1654_s1, 4  ;;  %s1469_s12 = smov [#allocation5]   ;;  %s38_s11 = int_to_ptr.hbm [resolvable:$true] %s37_s11 }
   0x6   :  { %s39_s13 = sshll.u32 %s1469_s12, 4  ;;  %s63_s16 = sshll.u32 %s1656_s3, 4  ;;  %s40_s13 = int_to_ptr.vmem [resolvable:$true] %s39_s13  ;;  %s64_s16 = int_to_ptr.hbm [resolvable:$true] %s63_s16 }
   0x7   :  { %s1470_s17 = smov 256   ;;  %s1471_s18 = smov 16  }
   0x8   :  { %45 = dma.hbm_to_vmem [thread:$0]  %s38_s11, 8192, %s40_s13, [#allocation6], %s1470_s17, %s1470_s17, %s1471_s18  }
   0x9   :  { %s1472_s19 = smov [#allocation8]   ;;  %s89_s1 = sshll.u32 %s1658_s5, 4  ;;  %s90_s1 = int_to_ptr.hbm [resolvable:$true] %s89_s1 }
   0xa   :  { %s65_s20 = sshll.u32 %s1472_s19, 4  ;;  %s1473_s3 = smov [#allocation11]   ;;  %s66_s20 = int_to_ptr.vmem [resolvable:$true] %s65_s20 }
   0xb   :  { %71 = dma.hbm_to_vmem [thread:$0]  %s64_s16, 8192, %s66_s20, [#allocation9], %s1470_s17, %s1470_s17, %s1471_s18  }
   0xc   :  { %s91_s23 = sshll.u32 %s1473_s3, 4  ;;  %s115_s26 = sshll.u32 %s1660_s7, 4  ;;  %s92_s23 = int_to_ptr.vmem [resolvable:$true] %s91_s23  ;;  %s116_s26 = int_to_ptr.hbm [resolvable:$true] %s115_s26 }
   0xd   :  { %97 = dma.hbm_to_vmem [thread:$0]  %s90_s1, 8192, %s92_s23, [#allocation12], %s1470_s17, %s1470_s17, %s1471_s18  }
   0xe   :  { %s1474_s27 = smov [#allocation14]   ;;  %s24_s30 = sshll.u32 %s1653_s0, 4  ;;  %s25_s30 = int_to_ptr.hbm [resolvable:$true] %s24_s30 }
   0xf   :  { %s117_s5 = sshll.u32 %s1474_s27, 4  ;;  %s1475_s10 = smov 128   ;;  %s118_s5 = int_to_ptr.vmem [resolvable:$true] %s117_s5 }
  0x10   :  { %s1476_s11 = smov 8   ;;  %s50_s13 = sshll.u32 %s1655_s2, 4  ;;  %s51_s13 = int_to_ptr.hbm [resolvable:$true] %s50_s13 }
  0x11   :  { %123 = dma.hbm_to_vmem [thread:$0]  %s116_s26, 4096, %s118_s5, [#allocation15], %s1475_s10, %s1475_s10, %s1476_s11  }
  0x12   :  { %s1477_s14 = smov [#allocation2]   ;;  %s1478_s0 = smov [#allocation7]  }
  0x13   :  { %s26_s15 = sshll.u32 %s1477_s14, 4  ;;  %s52_s16 = sshll.u32 %s1478_s0, 4  ;;  %s27_s15 = int_to_ptr.vmem [resolvable:$true] %s26_s15  ;;  %s53_s16 = int_to_ptr.vmem [resolvable:$true] %s52_s16 }
  0x14   :  { %32 = dma.hbm_to_vmem [thread:$0]  %s25_s30, 512, %s27_s15, [#allocation3], %s1470_s17, %s1470_s17, %s1471_s18  }
  0x15   :  { %s76_s21 = sshll.u32 %s1657_s4, 4  ;;  %s102_s1 = sshll.u32 %s1659_s6, 4  ;;  %s77_s21 = int_to_ptr.hbm [resolvable:$true] %s76_s21  ;;  %s103_s1 = int_to_ptr.hbm [resolvable:$true] %s102_s1 }
  0x16   :  { %58 = dma.hbm_to_vmem [thread:$0]  %s51_s13, 8192, %s53_s16, [#allocation6], %s1470_s17, %s1470_s17, %s1471_s18  }
  0x17   :  { %s1479_s3 = smov [#allocation10]   ;;  %s1480_s24 = smov [#allocation13]  }
  0x18   :  { %s78_s23 = sshll.u32 %s1479_s3, 4  ;;  %s104_s4 = sshll.u32 %s1480_s24, 4  ;;  %s79_s23 = int_to_ptr.vmem [resolvable:$true] %s78_s23  ;;  %s105_s4 = int_to_ptr.vmem [resolvable:$true] %s104_s4 }
  0x19   :  { %84 = dma.hbm_to_vmem [thread:$0]  %s77_s21, 8192, %s79_s23, [#allocation9], %s1470_s17, %s1470_s17, %s1471_s18  }
  0x1a   :  { %s129_s27 = sshll.u32 %s1661_s8, 4  ;;  %s1481_s6 = smov [#allocation16]   ;;  %s130_s27 = int_to_ptr.hbm [resolvable:$true] %s129_s27 }
  0x1b   :  { %110 = dma.hbm_to_vmem [thread:$0]  %s103_s1, 4096, %s105_s4, [#allocation12], %s1475_s10, %s1475_s10, %s1476_s11  }
  0x1c   :  { %s131_s5 = sshll.u32 %s1481_s6, 4  ;;  %s132_s5 = int_to_ptr.vmem [resolvable:$true] %s131_s5 }
  0x1d   :  { %134 = dma.hbm_to_vmem [thread:$0]  %s130_s27, 256, %s132_s5, [#allocation15]  }
  0x1e   :  { %1457 = dma.done.wait [#allocation3], 512  }
  0x1f   :  { %1458 = vsyncadd [#allocation3], 4294966784 }
  0x20   :  { %1459 = dma.done.wait [#allocation6], 16384  }
  0x21   :  { %1460 = vsyncadd [#allocation6], 4294950912 }
  0x22   :  { %1461 = dma.done.wait [#allocation9], 16384  }
  0x23   :  { %1462 = vsyncadd [#allocation9], 4294950912 }
  0x24   :  { %1463 = dma.done.wait [#allocation12], 12288  }
  0x25   :  { %1464 = vsyncadd [#allocation12], 4294955008 }
  0x26   :  { %1465 = dma.done.wait [#allocation15], 4352  }
  0x27   :  { %1466 = vsyncadd [#allocation15], 4294962944  ;;  %v211_v0 = vld [vmem:[#allocation5 + $0xf0] sm:$0xff]  ;;  %v212_v1 = vld [vmem:[#allocation5 + $0xf8] sm:$0xff]  ;;  %s1482_s8 = smov [#allocation17]   ;;  %s1186_s29 = sshll.u32 %s1662_s9, 4  ;;  %s1187_s29 = int_to_ptr.hbm [resolvable:$true] %s1186_s29 }
  0x28   :  { %v209_v2 = vld [vmem:[#allocation5 + $0xe0] sm:$0xff]  ;;  %250 = vmatpush.msra.mxu0 %v211_v0  ;;  %296 = vmatpush.msra.mxu2 %v212_v1  ;;  %v243_v3 = vld [vmem:[#allocation5 + $0x1f0] sm:$0xff]  ;;  %v210_v4 = vld [vmem:[#allocation5 + $0xe8] sm:$0xff]  ;;  %s1184_s17 = sshll.u32 %s1482_s8, 4  ;;  %s1185_s17 = int_to_ptr.vmem [resolvable:$true] %s1184_s17 }
  0x29   :  { %v244_v5 = vld [vmem:[#allocation5 + $0x1f8] sm:$0xff]  ;;  %273 = vmatpush.msra.mxu1 %v243_v3  ;;  %v207_v6 = vld [vmem:[#allocation5 + $0xd0] sm:$0xff]  ;;  %v241_v7 = vld [vmem:[#allocation5 + $0x1e0] sm:$0xff] }
  0x2a   :  { %319 = vmatpush.msra.mxu3 %v244_v5  ;;  %v208_v8 = vld [vmem:[#allocation5 + $0xd8] sm:$0xff]  ;;  %251 = vmatpush.msra.mxu0 %v209_v2  ;;  %v242_v9 = vld [vmem:[#allocation5 + $0x1e8] sm:$0xff]  ;;  %v239_v10 = vld [vmem:[#allocation5 + $0x1d0] sm:$0xff] }
  0x2b   :  { %297 = vmatpush.msra.mxu2 %v210_v4  ;;  %274 = vmatpush.msra.mxu1 %v241_v7  ;;  %v205_v11 = vld [vmem:[#allocation5 + $0xc0] sm:$0xff]  ;;  %v206_v12 = vld [vmem:[#allocation5 + $0xc8] sm:$0xff]  ;;  %v240_v13 = vld [vmem:[#allocation5 + $0x1d8] sm:$0xff] }
  0x2c   :  { %320 = vmatpush.msra.mxu3 %v242_v9  ;;  %252 = vmatpush.msra.mxu0 %v207_v6  ;;  %v237_v14 = vld [vmem:[#allocation5 + $0x1c0] sm:$0xff]  ;;  %v238_v15 = vld [vmem:[#allocation5 + $0x1c8] sm:$0xff]  ;;  %v203_v16 = vld [vmem:[#allocation5 + $0xb0] sm:$0xff] }
  0x2d   :  { %298 = vmatpush.msra.mxu2 %v208_v8  ;;  %275 = vmatpush.msra.mxu1 %v239_v10  ;;  %v204_v17 = vld [vmem:[#allocation5 + $0xb8] sm:$0xff]  ;;  %v235_v18 = vld [vmem:[#allocation5 + $0x1b0] sm:$0xff]  ;;  %v201_v20 = vld [vmem:[#allocation5 + $0xa0] sm:$0xff] }
  0x2e   :  { %321 = vmatpush.msra.mxu3 %v240_v13  ;;  %253 = vmatpush.msra.mxu0 %v205_v11  ;;  %v236_v19 = vld [vmem:[#allocation5 + $0x1b8] sm:$0xff]  ;;  %v202_v21 = vld [vmem:[#allocation5 + $0xa8] sm:$0xff]  ;;  %v233_v22 = vld [vmem:[#allocation5 + $0x1a0] sm:$0xff] }
  0x2f   :  { %299 = vmatpush.msra.mxu2 %v206_v12  ;;  %276 = vmatpush.msra.mxu1 %v237_v14  ;;  %v234_v23 = vld [vmem:[#allocation5 + $0x1a8] sm:$0xff]  ;;  %v199_v24 = vld [vmem:[#allocation5 + $0x90] sm:$0xff]  ;;  %v200_v25 = vld [vmem:[#allocation5 + $0x98] sm:$0xff] }
  0x30   :  { %322 = vmatpush.msra.mxu3 %v238_v15  ;;  %254 = vmatpush.msra.mxu0 %v203_v16  ;;  %v231_v26 = vld [vmem:[#allocation5 + $0x190] sm:$0xff]  ;;  %v232_v27 = vld [vmem:[#allocation5 + $0x198] sm:$0xff]  ;;  %v197_v28 = vld [vmem:[#allocation5 + $0x80] sm:$0xff] }
  0x31   :  { %300 = vmatpush.msra.mxu2 %v204_v17  ;;  %277 = vmatpush.msra.mxu1 %v235_v18  ;;  %v198_v29 = vld [vmem:[#allocation5 + $0x88] sm:$0xff]  ;;  %v229_v30 = vld [vmem:[#allocation5 + $0x180] sm:$0xff]  ;;  %v195_v32 = vld [vmem:[#allocation5 + $0x70] sm:$0xff] }
  0x32   :  { %323 = vmatpush.msra.mxu3 %v236_v19  ;;  %255 = vmatpush.msra.mxu0 %v201_v20  ;;  %v230_v31 = vld [vmem:[#allocation5 + $0x188] sm:$0xff]  ;;  %v196_v33 = vld [vmem:[#allocation5 + $0x78] sm:$0xff]  ;;  %v227_v34 = vld [vmem:[#allocation5 + $0x170] sm:$0xff] }
  0x33   :  { %301 = vmatpush.msra.mxu2 %v202_v21  ;;  %278 = vmatpush.msra.mxu1 %v233_v22  ;;  %v228_v35 = vld [vmem:[#allocation5 + $0x178] sm:$0xff]  ;;  %v193_v36 = vld [vmem:[#allocation5 + $0x60] sm:$0xff]  ;;  %v194_v37 = vld [vmem:[#allocation5 + $0x68] sm:$0xff] }
  0x34   :  { %324 = vmatpush.msra.mxu3 %v234_v23  ;;  %256 = vmatpush.msra.mxu0 %v199_v24  ;;  %v225_v38 = vld [vmem:[#allocation5 + $0x160] sm:$0xff]  ;;  %v226_v39 = vld [vmem:[#allocation5 + $0x168] sm:$0xff]  ;;  %v191_v40 = vld [vmem:[#allocation5 + $0x50] sm:$0xff] }
  0x35   :  { %302 = vmatpush.msra.mxu2 %v200_v25  ;;  %279 = vmatpush.msra.mxu1 %v231_v26  ;;  %v192_v41 = vld [vmem:[#allocation5 + $0x58] sm:$0xff]  ;;  %v223_v42 = vld [vmem:[#allocation5 + $0x150] sm:$0xff]  ;;  %v189_v44 = vld [vmem:[#allocation5 + $0x40] sm:$0xff] }
  0x36   :  { %325 = vmatpush.msra.mxu3 %v232_v27  ;;  %257 = vmatpush.msra.mxu0 %v197_v28  ;;  %v224_v43 = vld [vmem:[#allocation5 + $0x158] sm:$0xff]  ;;  %v190_v45 = vld [vmem:[#allocation5 + $0x48] sm:$0xff]  ;;  %v221_v46 = vld [vmem:[#allocation5 + $0x140] sm:$0xff] }
  0x37   :  { %303 = vmatpush.msra.mxu2 %v198_v29  ;;  %280 = vmatpush.msra.mxu1 %v229_v30  ;;  %v222_v47 = vld [vmem:[#allocation5 + $0x148] sm:$0xff]  ;;  %v187_v48 = vld [vmem:[#allocation5 + $0x30] sm:$0xff]  ;;  %v188_v49 = vld [vmem:[#allocation5 + $0x38] sm:$0xff] }
  0x38   :  { %326 = vmatpush.msra.mxu3 %v230_v31  ;;  %258 = vmatpush.msra.mxu0 %v195_v32  ;;  %v219_v50 = vld [vmem:[#allocation5 + $0x130] sm:$0xff]  ;;  %v220_v51 = vld [vmem:[#allocation5 + $0x138] sm:$0xff]  ;;  %v185_v52 = vld [vmem:[#allocation5 + $0x20] sm:$0xff] }
  0x39   :  { %304 = vmatpush.msra.mxu2 %v196_v33  ;;  %281 = vmatpush.msra.mxu1 %v227_v34  ;;  %v186_v53 = vld [vmem:[#allocation5 + $0x28] sm:$0xff]  ;;  %v217_v54 = vld [vmem:[#allocation5 + $0x120] sm:$0xff]  ;;  %v183_v56 = vld [vmem:[#allocation5 + $0x10] sm:$0xff] }
  0x3a   :  { %327 = vmatpush.msra.mxu3 %v228_v35  ;;  %259 = vmatpush.msra.mxu0 %v193_v36  ;;  %v218_v55 = vld [vmem:[#allocation5 + $0x128] sm:$0xff]  ;;  %v184_v57 = vld [vmem:[#allocation5 + $0x18] sm:$0xff]  ;;  %v215_v58 = vld [vmem:[#allocation5 + $0x110] sm:$0xff] }
  0x3b   :  { %305 = vmatpush.msra.mxu2 %v194_v37  ;;  %282 = vmatpush.msra.mxu1 %v225_v38  ;;  %v216_v59 = vld [vmem:[#allocation5 + $0x118] sm:$0xff]  ;;  %v181_v60 = vld [vmem:[#allocation5] sm:$0xff]  ;;  %v182_v61 = vld [vmem:[#allocation5 + $0x8] sm:$0xff] }
  0x3c   :  { %328 = vmatpush.msra.mxu3 %v226_v39  ;;  %260 = vmatpush.msra.mxu0 %v191_v40  ;;  %v1584_v62 = vld [vmem:[#allocation2] sm:$0xff]  ;;  %v214_v0 = vld [vmem:[#allocation5 + $0x108] sm:$0xff]  ;;  %v448_v2 = vld [vmem:[#allocation8 + $0xf0] sm:$0xff] }
  0x3d   :  { %306 = vmatpush.msra.mxu2 %v192_v41  ;;  %283 = vmatpush.msra.mxu1 %v223_v42  ;;  %v213_v63 = vld [vmem:[#allocation5 + $0x100] sm:$0xff]  ;;  %v1586_v1 = vld [vmem:[#allocation2 + $0x8] sm:$0xff]  ;;  %v449_v3 = vld [vmem:[#allocation8 + $0xf8] sm:$0xff] }
  0x3e   :  { %329 = vmatpush.msra.mxu3 %v224_v43  ;;  %261 = vmatpush.msra.mxu0 %v189_v44  ;;  %v480_v4 = vld [vmem:[#allocation8 + $0x1f0] sm:$0xff]  ;;  %v481_v5 = vld [vmem:[#allocation8 + $0x1f8] sm:$0xff]  ;;  %v446_v6 = vld [vmem:[#allocation8 + $0xe0] sm:$0xff] }
  0x3f   :  { %307 = vmatpush.msra.mxu2 %v190_v45  ;;  %284 = vmatpush.msra.mxu1 %v221_v46  ;;  %v447_v7 = vld [vmem:[#allocation8 + $0xe8] sm:$0xff]  ;;  %v478_v8 = vld [vmem:[#allocation8 + $0x1e0] sm:$0xff]  ;;  %v444_v10 = vld [vmem:[#allocation8 + $0xd0] sm:$0xff] }
  0x40   :  { %330 = vmatpush.msra.mxu3 %v222_v47  ;;  %262 = vmatpush.msra.mxu0 %v187_v48  ;;  %v479_v9 = vld [vmem:[#allocation8 + $0x1e8] sm:$0xff]  ;;  %v445_v11 = vld [vmem:[#allocation8 + $0xd8] sm:$0xff]  ;;  %v1592_v12 = vld [vmem:[#allocation2 + $0x10] sm:$0xff] }
  0x41   :  { %308 = vmatpush.msra.mxu2 %v188_v49  ;;  %285 = vmatpush.msra.mxu1 %v219_v50  ;;  %v442_v13 = vld [vmem:[#allocation8 + $0xc0] sm:$0xff]  ;;  %v443_v14 = vld [vmem:[#allocation8 + $0xc8] sm:$0xff]  ;;  %v1594_v15 = vld [vmem:[#allocation2 + $0x18] sm:$0xff] }
  0x42   :  { %331 = vmatpush.msra.mxu3 %v220_v51  ;;  %263 = vmatpush.msra.mxu0 %v185_v52  ;;  %v440_v16 = vld [vmem:[#allocation8 + $0xb0] sm:$0xff]  ;;  %v441_v17 = vld [vmem:[#allocation8 + $0xb8] sm:$0xff]  ;;  %v438_v20 = vld [vmem:[#allocation8 + $0xa0] sm:$0xff] }
  0x43   :  { %309 = vmatpush.msra.mxu2 %v186_v53  ;;  %286 = vmatpush.msra.mxu1 %v217_v54  ;;  %v476_v18 = vld [vmem:[#allocation8 + $0x1d0] sm:$0xff]  ;;  %v477_v19 = vld [vmem:[#allocation8 + $0x1d8] sm:$0xff]  ;;  %v439_v21 = vld [vmem:[#allocation8 + $0xa8] sm:$0xff] }
  0x44   :  { %332 = vmatpush.msra.mxu3 %v218_v55  ;;  %264 = vmatpush.msra.mxu0 %v183_v56  ;;  %v474_v22 = vld [vmem:[#allocation8 + $0x1c0] sm:$0xff]  ;;  %v475_v23 = vld [vmem:[#allocation8 + $0x1c8] sm:$0xff]  ;;  %v436_v24 = vld [vmem:[#allocation8 + $0x90] sm:$0xff] }
  0x45   :  { %310 = vmatpush.msra.mxu2 %v184_v57  ;;  %287 = vmatpush.msra.mxu1 %v215_v58  ;;  %v437_v25 = vld [vmem:[#allocation8 + $0x98] sm:$0xff]  ;;  %v472_v26 = vld [vmem:[#allocation8 + $0x1b0] sm:$0xff]  ;;  %v434_v28 = vld [vmem:[#allocation8 + $0x80] sm:$0xff] }
  0x46   :  { %333 = vmatpush.msra.mxu3 %v216_v59  ;;  %265 = vmatpush.msra.mxu0 %v181_v60  ;;  %v473_v27 = vld [vmem:[#allocation8 + $0x1b8] sm:$0xff]  ;;  %v435_v29 = vld [vmem:[#allocation8 + $0x88] sm:$0xff]  ;;  %v470_v30 = vld [vmem:[#allocation8 + $0x1a0] sm:$0xff] }
  0x47   :  { %311 = vmatpush.msra.mxu2 %v182_v61  ;;  %266 = vmatmul.f32.vlgmr.msra.gmra.mxu0 %v1584_v62  ;;  %v471_v31 = vld [vmem:[#allocation8 + $0x1a8] sm:$0xff]  ;;  %v432_v32 = vld [vmem:[#allocation8 + $0x70] sm:$0xff]  ;;  %v433_v33 = vld [vmem:[#allocation8 + $0x78] sm:$0xff] }
  0x48   :  { %312 = vmatmul.f32.vlgmr.msra.gmra.mxu2 %v1584_v62  ;;  %288 = vmatpush.msra.mxu1 %v213_v63  ;;  %v468_v34 = vld [vmem:[#allocation8 + $0x190] sm:$0xff]  ;;  %v469_v35 = vld [vmem:[#allocation8 + $0x198] sm:$0xff]  ;;  %v430_v36 = vld [vmem:[#allocation8 + $0x60] sm:$0xff] }
  0x49   :  { %334 = vmatpush.msra.mxu3 %v214_v0  ;;  %289 = vmatmul.f32.vlgmr.msra.gmra.mxu1 %v1586_v1  ;;  %v431_v37 = vld [vmem:[#allocation8 + $0x68] sm:$0xff]  ;;  %v466_v38 = vld [vmem:[#allocation8 + $0x180] sm:$0xff]  ;;  %v428_v40 = vld [vmem:[#allocation8 + $0x50] sm:$0xff] }
  0x4a   :  { %335 = vmatmul.f32.vlgmr.msra.gmra.mxu3 %v1586_v1  ;;  %482 = vmatpush.msrb.mxu0 %v448_v2  ;;  %v467_v39 = vld [vmem:[#allocation8 + $0x188] sm:$0xff]  ;;  %v429_v41 = vld [vmem:[#allocation8 + $0x58] sm:$0xff]  ;;  %v464_v42 = vld [vmem:[#allocation8 + $0x170] sm:$0xff] }
  0x4b   :  { %528 = vmatpush.msrb.mxu2 %v449_v3  ;;  %505 = vmatpush.msrb.mxu1 %v480_v4  ;;  %v465_v43 = vld [vmem:[#allocation8 + $0x178] sm:$0xff]  ;;  %v426_v44 = vld [vmem:[#allocation8 + $0x40] sm:$0xff]  ;;  %v427_v45 = vld [vmem:[#allocation8 + $0x48] sm:$0xff] }
  0x4c   :  { %551 = vmatpush.msrb.mxu3 %v481_v5  ;;  %483 = vmatpush.msrb.mxu0 %v446_v6  ;;  %v462_v46 = vld [vmem:[#allocation8 + $0x160] sm:$0xff]  ;;  %v463_v47 = vld [vmem:[#allocation8 + $0x168] sm:$0xff]  ;;  %v424_v48 = vld [vmem:[#allocation8 + $0x30] sm:$0xff] }
  0x4d   :  { %529 = vmatpush.msrb.mxu2 %v447_v7  ;;  %506 = vmatpush.msrb.mxu1 %v478_v8  ;;  %v425_v49 = vld [vmem:[#allocation8 + $0x38] sm:$0xff]  ;;  %v460_v50 = vld [vmem:[#allocation8 + $0x150] sm:$0xff]  ;;  %v422_v52 = vld [vmem:[#allocation8 + $0x20] sm:$0xff] }
  0x4e   :  { %552 = vmatpush.msrb.mxu3 %v479_v9  ;;  %484 = vmatpush.msrb.mxu0 %v444_v10  ;;  %v461_v51 = vld [vmem:[#allocation8 + $0x158] sm:$0xff]  ;;  %v423_v53 = vld [vmem:[#allocation8 + $0x28] sm:$0xff]  ;;  %v458_v54 = vld [vmem:[#allocation8 + $0x140] sm:$0xff] }
  0x4f   :  { %530 = vmatpush.msrb.mxu2 %v445_v11  ;;  %269 = vmatmul.f32.gmra.mxu0 %v1592_v12  ;;  %v459_v55 = vld [vmem:[#allocation8 + $0x148] sm:$0xff]  ;;  %v420_v56 = vld [vmem:[#allocation8 + $0x10] sm:$0xff]  ;;  %v421_v57 = vld [vmem:[#allocation8 + $0x18] sm:$0xff] }
  0x50   :  { %315 = vmatmul.f32.gmra.mxu2 %v1592_v12  ;;  %485 = vmatpush.msrb.mxu0 %v442_v13  ;;  %v456_v58 = vld [vmem:[#allocation8 + $0x130] sm:$0xff]  ;;  %v457_v59 = vld [vmem:[#allocation8 + $0x138] sm:$0xff]  ;;  %v418_v60 = vld [vmem:[#allocation8] sm:$0xff] }
  0x51   :  { %531 = vmatpush.msrb.mxu2 %v443_v14  ;;  %292 = vmatmul.f32.gmra.mxu1 %v1594_v15  ;;  %v419_v61 = vld [vmem:[#allocation8 + $0x8] sm:$0xff]  ;;  %v384_v63 = vld [vmem:[#allocation7 + $0xf0] sm:$0xff]  ;;  %v385_v0 = vld [vmem:[#allocation7 + $0xf8] sm:$0xff] }
  0x52   :  { %338 = vmatmul.f32.gmra.mxu3 %v1594_v15  ;;  %486 = vmatpush.msrb.mxu0 %v440_v16  ;;  %v454_v2 = vld [vmem:[#allocation8 + $0x120] sm:$0xff]  ;;  %v455_v3 = vld [vmem:[#allocation8 + $0x128] sm:$0xff]  ;;  %v452_v6 = vld [vmem:[#allocation8 + $0x110] sm:$0xff] }
  0x53   :  { %532 = vmatpush.msrb.mxu2 %v441_v17  ;;  %507 = vmatpush.msrb.mxu1 %v476_v18  ;;  %v382_v4 = vld [vmem:[#allocation7 + $0xe0] sm:$0xff]  ;;  %v383_v5 = vld [vmem:[#allocation7 + $0xe8] sm:$0xff]  ;;  %v453_v7 = vld [vmem:[#allocation8 + $0x118] sm:$0xff] }
  0x54   :  { %553 = vmatpush.msrb.mxu3 %v477_v19  ;;  %487 = vmatpush.msrb.mxu0 %v438_v20  ;;  %v380_v8 = vld [vmem:[#allocation7 + $0xd0] sm:$0xff]  ;;  %v381_v9 = vld [vmem:[#allocation7 + $0xd8] sm:$0xff]  ;;  %v450_v10 = vld [vmem:[#allocation8 + $0x100] sm:$0xff] }
  0x55   :  { %533 = vmatpush.msrb.mxu2 %v439_v21  ;;  %508 = vmatpush.msrb.mxu1 %v474_v22  ;;  %v451_v11 = vld [vmem:[#allocation8 + $0x108] sm:$0xff]  ;;  %v378_v13 = vld [vmem:[#allocation7 + $0xc0] sm:$0xff]  ;;  %v416_v14 = vld [vmem:[#allocation7 + $0x1f0] sm:$0xff] }
  0x56   :  { %554 = vmatpush.msrb.mxu3 %v475_v23  ;;  %488 = vmatpush.msrb.mxu0 %v436_v24  ;;  %v379_v16 = vld [vmem:[#allocation7 + $0xc8] sm:$0xff]  ;;  %v417_v17 = vld [vmem:[#allocation7 + $0x1f8] sm:$0xff]  ;;  %v376_v18 = vld [vmem:[#allocation7 + $0xb0] sm:$0xff] }
  0x57   :  { %534 = vmatpush.msrb.mxu2 %v437_v25  ;;  %509 = vmatpush.msrb.mxu1 %v472_v26  ;;  %v414_v19 = vld [vmem:[#allocation7 + $0x1e0] sm:$0xff]  ;;  %v377_v20 = vld [vmem:[#allocation7 + $0xb8] sm:$0xff]  ;;  %v415_v21 = vld [vmem:[#allocation7 + $0x1e8] sm:$0xff] }
  0x58   :  { %555 = vmatpush.msrb.mxu3 %v473_v27  ;;  %489 = vmatpush.msrb.mxu0 %v434_v28  ;;  %v374_v22 = vld [vmem:[#allocation7 + $0xa0] sm:$0xff]  ;;  %v412_v23 = vld [vmem:[#allocation7 + $0x1d0] sm:$0xff]  ;;  %v375_v24 = vld [vmem:[#allocation7 + $0xa8] sm:$0xff] }
  0x59   :  { %535 = vmatpush.msrb.mxu2 %v435_v29  ;;  %510 = vmatpush.msrb.mxu1 %v470_v30  ;;  %v413_v25 = vld [vmem:[#allocation7 + $0x1d8] sm:$0xff]  ;;  %v372_v26 = vld [vmem:[#allocation7 + $0x90] sm:$0xff]  ;;  %v410_v27 = vld [vmem:[#allocation7 + $0x1c0] sm:$0xff] }
  0x5a   :  { %556 = vmatpush.msrb.mxu3 %v471_v31  ;;  %490 = vmatpush.msrb.mxu0 %v432_v32  ;;  %v373_v28 = vld [vmem:[#allocation7 + $0x98] sm:$0xff]  ;;  %v411_v29 = vld [vmem:[#allocation7 + $0x1c8] sm:$0xff]  ;;  %v370_v30 = vld [vmem:[#allocation7 + $0x80] sm:$0xff] }
  0x5b   :  { %536 = vmatpush.msrb.mxu2 %v433_v33  ;;  %511 = vmatpush.msrb.mxu1 %v468_v34  ;;  %v408_v31 = vld [vmem:[#allocation7 + $0x1b0] sm:$0xff]  ;;  %v371_v32 = vld [vmem:[#allocation7 + $0x88] sm:$0xff]  ;;  %v409_v33 = vld [vmem:[#allocation7 + $0x1b8] sm:$0xff] }
  0x5c   :  { %557 = vmatpush.msrb.mxu3 %v469_v35  ;;  %491 = vmatpush.msrb.mxu0 %v430_v36  ;;  %v368_v34 = vld [vmem:[#allocation7 + $0x70] sm:$0xff]  ;;  %v406_v35 = vld [vmem:[#allocation7 + $0x1a0] sm:$0xff]  ;;  %v369_v36 = vld [vmem:[#allocation7 + $0x78] sm:$0xff] }
  0x5d   :  { %537 = vmatpush.msrb.mxu2 %v431_v37  ;;  %512 = vmatpush.msrb.mxu1 %v466_v38  ;;  %v407_v37 = vld [vmem:[#allocation7 + $0x1a8] sm:$0xff]  ;;  %v366_v38 = vld [vmem:[#allocation7 + $0x60] sm:$0xff] }
  0x5e   :  { %558 = vmatpush.msrb.mxu3 %v467_v39  ;;  %492 = vmatpush.msrb.mxu0 %v428_v40  ;;  %v404_v39 = vld [vmem:[#allocation7 + $0x190] sm:$0xff]  ;;  %v367_v40 = vld [vmem:[#allocation7 + $0x68] sm:$0xff] }
  0x5f   :  { %538 = vmatpush.msrb.mxu2 %v429_v41  ;;  %513 = vmatpush.msrb.mxu1 %v464_v42  ;;  %v405_v41 = vld [vmem:[#allocation7 + $0x198] sm:$0xff]  ;;  %v364_v42 = vld [vmem:[#allocation7 + $0x50] sm:$0xff] }
  0x60   :  { %559 = vmatpush.msrb.mxu3 %v465_v43  ;;  %493 = vmatpush.msrb.mxu0 %v426_v44  ;;  %v402_v43 = vld [vmem:[#allocation7 + $0x180] sm:$0xff]  ;;  %v365_v44 = vld [vmem:[#allocation7 + $0x58] sm:$0xff] }
  0x61   :  { %539 = vmatpush.msrb.mxu2 %v427_v45  ;;  %514 = vmatpush.msrb.mxu1 %v462_v46  ;;  %v403_v45 = vld [vmem:[#allocation7 + $0x188] sm:$0xff]  ;;  %v362_v46 = vld [vmem:[#allocation7 + $0x40] sm:$0xff] }
  0x62   :  { %560 = vmatpush.msrb.mxu3 %v463_v47  ;;  %494 = vmatpush.msrb.mxu0 %v424_v48  ;;  %v400_v47 = vld [vmem:[#allocation7 + $0x170] sm:$0xff]  ;;  %v363_v48 = vld [vmem:[#allocation7 + $0x48] sm:$0xff] }
  0x63   :  { %540 = vmatpush.msrb.mxu2 %v425_v49  ;;  %515 = vmatpush.msrb.mxu1 %v460_v50  ;;  %v401_v49 = vld [vmem:[#allocation7 + $0x178] sm:$0xff]  ;;  %v360_v50 = vld [vmem:[#allocation7 + $0x30] sm:$0xff] }
  0x64   :  { %561 = vmatpush.msrb.mxu3 %v461_v51  ;;  %495 = vmatpush.msrb.mxu0 %v422_v52  ;;  %v398_v51 = vld [vmem:[#allocation7 + $0x160] sm:$0xff]  ;;  %v361_v52 = vld [vmem:[#allocation7 + $0x38] sm:$0xff] }
  0x65   :  { %541 = vmatpush.msrb.mxu2 %v423_v53  ;;  %516 = vmatpush.msrb.mxu1 %v458_v54  ;;  %v399_v53 = vld [vmem:[#allocation7 + $0x168] sm:$0xff]  ;;  %v358_v54 = vld [vmem:[#allocation7 + $0x20] sm:$0xff] }
  0x66   :  { %562 = vmatpush.msrb.mxu3 %v459_v55  ;;  %496 = vmatpush.msrb.mxu0 %v420_v56  ;;  %v396_v55 = vld [vmem:[#allocation7 + $0x150] sm:$0xff]  ;;  %v359_v56 = vld [vmem:[#allocation7 + $0x28] sm:$0xff] }
  0x67   :  { %542 = vmatpush.msrb.mxu2 %v421_v57  ;;  %517 = vmatpush.msrb.mxu1 %v456_v58  ;;  %v397_v57 = vld [vmem:[#allocation7 + $0x158] sm:$0xff]  ;;  %v356_v58 = vld [vmem:[#allocation7 + $0x10] sm:$0xff] }
  0x68   :  { %563 = vmatpush.msrb.mxu3 %v457_v59  ;;  %497 = vmatpush.msrb.mxu0 %v418_v60  ;;  %v394_v59 = vld [vmem:[#allocation7 + $0x140] sm:$0xff]  ;;  %v357_v60 = vld [vmem:[#allocation7 + $0x18] sm:$0xff] }
  0x69   :  { %543 = vmatpush.msrb.mxu2 %v419_v61  ;;  %518 = vmatpush.msrb.mxu1 %v454_v2  ;;  %v395_v61 = vld [vmem:[#allocation7 + $0x148] sm:$0xff] }
  0x6a   :  { %574 = vmatpush.msra.mxu0 %v384_v63  ;;  %564 = vmatpush.msrb.mxu3 %v455_v3  ;;  %v354_v63 = vld [vmem:[#allocation7] sm:$0xff]  ;;  %v355_v2 = vld [vmem:[#allocation7 + $0x8] sm:$0xff]  ;;  %v393_v3 = vld [vmem:[#allocation7 + $0x138] sm:$0xff] }
  0x6b   :  { %620 = vmatpush.msra.mxu2 %v385_v0  ;;  %519 = vmatpush.msrb.mxu1 %v452_v6  ;;  %v392_v0 = vld [vmem:[#allocation7 + $0x130] sm:$0xff] }
  0x6c   :  { %575 = vmatpush.msra.mxu0 %v382_v4  ;;  %565 = vmatpush.msrb.mxu3 %v453_v7  ;;  %v390_v4 = vld [vmem:[#allocation7 + $0x120] sm:$0xff]  ;;  %v388_v6 = vld [vmem:[#allocation7 + $0x110] sm:$0xff]  ;;  %v389_v7 = vld [vmem:[#allocation7 + $0x118] sm:$0xff] }
  0x6d   :  { %621 = vmatpush.msra.mxu2 %v383_v5  ;;  %520 = vmatpush.msrb.mxu1 %v450_v10  ;;  %v391_v5 = vld [vmem:[#allocation7 + $0x128] sm:$0xff] }
  0x6e   :  { %576 = vmatpush.msra.mxu0 %v380_v8  ;;  %566 = vmatpush.msrb.mxu3 %v451_v11  ;;  %v171_v8 = vld [vmem:[#allocation16] ss:$8 sm:$0x3] }
  0x6f   :  { %622 = vmatpush.msra.mxu2 %v381_v9  ;;  %597 = vmatpush.msra.mxu1 %v416_v14  ;;  %v386_v9 = vld [vmem:[#allocation7 + $0x100] sm:$0xff]  ;;  %v387_v10 = vld [vmem:[#allocation7 + $0x108] sm:$0xff]  ;;  %v246_v11 = vperm.slane %v171_v8, 0 }
  0x70   :  { %577 = vmatpush.msra.mxu0 %v378_v13  ;;  %643 = vmatpush.msra.mxu3 %v417_v17 }
  0x71   :  { %623 = vmatpush.msra.mxu2 %v379_v16  ;;  %598 = vmatpush.msra.mxu1 %v414_v19 }
  0x72   :  { %578 = vmatpush.msra.mxu0 %v376_v18  ;;  %644 = vmatpush.msra.mxu3 %v415_v21  ;;  %v247_v18 = vperm.slane %v171_v8, 1  ;;  %v782_v21 = vld [vmem:[#allocation11 + $0xf8] sm:$0xff]  ;;  %v796_v8 = vld [vmem:[#allocation11 + $0x168] sm:$0xff] }
  0x73   :  { %624 = vmatpush.msra.mxu2 %v377_v20  ;;  %599 = vmatpush.msra.mxu1 %v412_v23 }
  0x74   :  { %579 = vmatpush.msra.mxu0 %v374_v22  ;;  %645 = vmatpush.msra.mxu3 %v413_v25 }
  0x75   :  { %625 = vmatpush.msra.mxu2 %v375_v24  ;;  %600 = vmatpush.msra.mxu1 %v410_v27 }
  0x76   :  { %580 = vmatpush.msra.mxu0 %v372_v26  ;;  %646 = vmatpush.msra.mxu3 %v411_v29  ;;  %v780_v26 = vld [vmem:[#allocation11 + $0xe8] sm:$0xff] }
  0x77   :  { %626 = vmatpush.msra.mxu2 %v373_v28  ;;  %601 = vmatpush.msra.mxu1 %v408_v31  ;;  %v781_v31 = vld [vmem:[#allocation11 + $0xf0] sm:$0xff] }
  0x78   :  { %581 = vmatpush.msra.mxu0 %v370_v30  ;;  %647 = vmatpush.msra.mxu3 %v409_v33  ;;  %v778_v30 = vld [vmem:[#allocation11 + $0xd8] sm:$0xff] }
  0x79   :  { %627 = vmatpush.msra.mxu2 %v371_v32  ;;  %602 = vmatpush.msra.mxu1 %v406_v35  ;;  %v776_v35 = vld [vmem:[#allocation11 + $0xc8] sm:$0xff] }
  0x7a   :  { %582 = vmatpush.msra.mxu0 %v368_v34  ;;  %648 = vmatpush.msra.mxu3 %v407_v37  ;;  %v779_v34 = vld [vmem:[#allocation11 + $0xe0] sm:$0xff] }
  0x7b   :  { %628 = vmatpush.msra.mxu2 %v369_v36  ;;  %603 = vmatpush.msra.mxu1 %v404_v39  ;;  %v814_v36 = vld [vmem:[#allocation11 + $0x1f8] sm:$0xff] }
  0x7c   :  { %583 = vmatpush.msra.mxu0 %v366_v38  ;;  %649 = vmatpush.msra.mxu3 %v405_v41  ;;  %v812_v41 = vld [vmem:[#allocation11 + $0x1e8] sm:$0xff] }
  0x7d   :  { %629 = vmatpush.msra.mxu2 %v367_v40  ;;  %604 = vmatpush.msra.mxu1 %v402_v43  ;;  %v774_v40 = vld [vmem:[#allocation11 + $0xb8] sm:$0xff] }
  0x7e   :  { %584 = vmatpush.msra.mxu0 %v364_v42  ;;  %650 = vmatpush.msra.mxu3 %v403_v45  ;;  %v813_v45 = vld [vmem:[#allocation11 + $0x1f0] sm:$0xff] }
  0x7f   :  { %630 = vmatpush.msra.mxu2 %v365_v44  ;;  %605 = vmatpush.msra.mxu1 %v400_v47  ;;  %v777_v44 = vld [vmem:[#allocation11 + $0xd0] sm:$0xff]  ;;  %v772_v47 = vld [vmem:[#allocation11 + $0xa8] sm:$0xff] }
  0x80   :  { %585 = vmatpush.msra.mxu0 %v362_v46  ;;  %651 = vmatpush.msra.mxu3 %v401_v49 }
  0x81   :  { %631 = vmatpush.msra.mxu2 %v363_v48  ;;  %606 = vmatpush.msra.mxu1 %v398_v51  ;;  %v810_v48 = vld [vmem:[#allocation11 + $0x1d8] sm:$0xff]  ;;  %v811_v51 = vld [vmem:[#allocation11 + $0x1e0] sm:$0xff] }
  0x82   :  { %586 = vmatpush.msra.mxu0 %v360_v50  ;;  %652 = vmatpush.msra.mxu3 %v399_v53  ;;  %v775_v50 = vld [vmem:[#allocation11 + $0xc0] sm:$0xff]  ;;  %v808_v53 = vld [vmem:[#allocation11 + $0x1c8] sm:$0xff] }
  0x83   :  { %632 = vmatpush.msra.mxu2 %v361_v52  ;;  %607 = vmatpush.msra.mxu1 %v396_v55  ;;  %v770_v52 = vld [vmem:[#allocation11 + $0x98] sm:$0xff]  ;;  %v768_v55 = vld [vmem:[#allocation11 + $0x88] sm:$0xff] }
  0x84   :  { %587 = vmatpush.msra.mxu0 %v358_v54  ;;  %653 = vmatpush.msra.mxu3 %v397_v57 }
  0x85   :  { %633 = vmatpush.msra.mxu2 %v359_v56  ;;  %608 = vmatpush.msra.mxu1 %v394_v59  ;;  %v806_v56 = vld [vmem:[#allocation11 + $0x1b8] sm:$0xff]  ;;  %v804_v59 = vld [vmem:[#allocation11 + $0x1a8] sm:$0xff] }
  0x86   :  { %588 = vmatpush.msra.mxu0 %v356_v58  ;;  %654 = vmatpush.msra.mxu3 %v395_v61  ;;  %v766_v58 = vld [vmem:[#allocation11 + $0x78] sm:$0xff]  ;;  %v809_v61 = vld [vmem:[#allocation11 + $0x1d0] sm:$0xff] }
  0x87   :  { %634 = vmatpush.msra.mxu2 %v357_v60  ;;  %609 = vmatpush.msra.mxu1 %v392_v0  ;;  %v773_v60 = vld [vmem:[#allocation11 + $0xb0] sm:$0xff]  ;;  %v802_v0 = vld [vmem:[#allocation11 + $0x198] sm:$0xff] }
  0x88   :  { %589 = vmatpush.msra.mxu0 %v354_v63  ;;  %655 = vmatpush.msra.mxu3 %v393_v3  ;;  %v764_v63 = vld [vmem:[#allocation11 + $0x68] sm:$0xff]  ;;  %v807_v3 = vld [vmem:[#allocation11 + $0x1c0] sm:$0xff] }
  0x89   :  { %635 = vmatpush.msra.mxu2 %v355_v2  ;;  %610 = vmatpush.msra.mxu1 %v390_v4  ;;  %v771_v2 = vld [vmem:[#allocation11 + $0xa0] sm:$0xff]  ;;  %v762_v4 = vld [vmem:[#allocation11 + $0x58] sm:$0xff] }
  0x8a   :  { %656 = vmatpush.msra.mxu3 %v391_v5  ;;  %v800_v5 = vld [vmem:[#allocation11 + $0x188] sm:$0xff] }
  0x8b   :  { %611 = vmatpush.msra.mxu1 %v388_v6  ;;  %v760_v6 = vld [vmem:[#allocation11 + $0x48] sm:$0xff] }
  0x8c   :  { %657 = vmatpush.msra.mxu3 %v389_v7  ;;  %v798_v7 = vld [vmem:[#allocation11 + $0x178] sm:$0xff] }
  0x8d   :  { %612 = vmatpush.msra.mxu1 %v386_v9  ;;  %v769_v9 = vld [vmem:[#allocation11 + $0x90] sm:$0xff] }
  0x8e   :  { %658 = vmatpush.msra.mxu3 %v387_v10  ;;  %v805_v10 = vld [vmem:[#allocation11 + $0x1b0] sm:$0xff] }
  0xc4   :  { %v267_v13 = vpop.f32.mrf.mxu0 }
  0xc5   :  { %v268_v14 = vadd.f32 %v267_v13, %v246_v11  ;;  %v794_v13 = vld [vmem:[#allocation11 + $0x158] sm:$0xff] }
  0xc6   :  { %v290_v16 = vpop.f32.mrf.mxu1 }
  0xc7   :  { %v291_v17 = vadd.f32 %v290_v16, %v268_v14  ;;  %v767_v14 = vld [vmem:[#allocation11 + $0x80] sm:$0xff]  ;;  %v754_v16 = vld [vmem:[#allocation11 + $0x18] sm:$0xff] }
  0xc9   :  { %vm342_vm0 = vcmp.ge.f32.partialorder %v291_v17, 0.0  ;;  %v346_v19 = vmul.f32 0.01, %v291_v17 }
  0xcb   :  { %v313_v20 = vpop.f32.mrf.mxu2  ;;  %v1600_v23 = vsel %vm342_vm0, %v291_v17, %v346_v19  ;;  %v792_v17 = vld [vmem:[#allocation11 + $0x148] sm:$0xff]  ;;  %v803_v19 = vld [vmem:[#allocation11 + $0x1a0] sm:$0xff] }
  0xcc   :  { %v314_v22 = vadd.f32 %v313_v20, %v247_v18  ;;  %v270_v24 = vpop.f32.mrf.mxu0  ;;  %498 = vmatmul.f32.vlgmr.msrb.gmra.mxu0 %v1600_v23  ;;  %544 = vmatmul.f32.vlgmr.msrb.gmra.mxu2 %v1600_v23  ;;  %v718_v20 = vld [vmem:[#allocation10 + $0xf8] sm:$0xff] }
  0xcd   :  { %v336_v25 = vpop.f32.mrf.mxu3  ;;  %v271_v27 = vadd.f32 %v270_v24, %v246_v11  ;;  %861 = vmatpush.msrb.mxu2 %v782_v21  ;;  %815 = vmatpush.msrb.mxu0 %v781_v31  ;;  %v756_v11 = vld [vmem:[#allocation11 + $0x28] sm:$0xff]  ;;  %v801_v24 = vld [vmem:[#allocation11 + $0x190] sm:$0xff] }
  0xce   :  { %v337_v28 = vadd.f32 %v336_v25, %v314_v22  ;;  %v293_v29 = vpop.f32.mrf.mxu1  ;;  %v788_v21 = vld [vmem:[#allocation11 + $0x128] sm:$0xff]  ;;  %v763_v22 = vld [vmem:[#allocation11 + $0x60] sm:$0xff]  ;;  %v797_v31 = vld [vmem:[#allocation11 + $0x170] sm:$0xff] }
  0xcf   :  { %v294_v33 = vadd.f32 %v293_v29, %v271_v27  ;;  %862 = vmatpush.msrb.mxu2 %v780_v26  ;;  %816 = vmatpush.msrb.mxu0 %v779_v34  ;;  %v716_v25 = vld [vmem:[#allocation10 + $0xe8] sm:$0xff]  ;;  %v786_v26 = vld [vmem:[#allocation11 + $0x118] sm:$0xff]  ;;  %v761_v27 = vld [vmem:[#allocation11 + $0x50] sm:$0xff] }
  0xd0   :  { %vm343_vm1 = vcmp.ge.f32.partialorder %v337_v28, 0.0  ;;  %v347_v32 = vmul.f32 0.01, %v337_v28  ;;  %v714_v29 = vld [vmem:[#allocation10 + $0xd8] sm:$0xff]  ;;  %v757_v34 = vld [vmem:[#allocation11 + $0x30] sm:$0xff] }
  0xd1   :  { %vm344_vm2 = vcmp.ge.f32.partialorder %v294_v33, 0.0  ;;  %v348_v37 = vmul.f32 0.01, %v294_v33  ;;  %863 = vmatpush.msrb.mxu2 %v778_v30  ;;  %817 = vmatpush.msrb.mxu0 %v777_v44  ;;  %v759_v30 = vld [vmem:[#allocation11 + $0x40] sm:$0xff]  ;;  %v753_v44 = vld [vmem:[#allocation11 + $0x10] sm:$0xff] }
  0xd2   :  { %v1604_v38 = vsel %vm343_vm1, %v337_v28, %v347_v32  ;;  %v799_v28 = vld [vmem:[#allocation11 + $0x180] sm:$0xff]  ;;  %v712_v32 = vld [vmem:[#allocation10 + $0xc8] sm:$0xff] }
  0xd3   :  { %v316_v39 = vpop.f32.mrf.mxu2  ;;  %521 = vmatmul.f32.vlgmr.msrb.gmra.mxu1 %v1604_v38  ;;  %567 = vmatmul.f32.vlgmr.msrb.gmra.mxu3 %v1604_v38  ;;  %v1608_v43 = vsel %vm344_vm2, %v294_v33, %v348_v37  ;;  %v750_v33 = vld [vmem:[#allocation10 + $0x1f8] sm:$0xff]  ;;  %v748_v37 = vld [vmem:[#allocation10 + $0x1e8] sm:$0xff] }
  0xd4   :  { %v317_v42 = vadd.f32 %v316_v39, %v247_v18  ;;  %864 = vmatpush.msrb.mxu2 %v776_v35  ;;  %884 = vmatpush.msrb.mxu3 %v814_v36  ;;  %v790_v18 = vld [vmem:[#allocation11 + $0x138] sm:$0xff]  ;;  %v795_v35 = vld [vmem:[#allocation11 + $0x160] sm:$0xff] }
  0xd5   :  { %v339_v46 = vpop.f32.mrf.mxu3  ;;  %501 = vmatmul.f32.gmra.mxu0 %v1608_v43  ;;  %547 = vmatmul.f32.gmra.mxu2 %v1608_v43  ;;  %v710_v36 = vld [vmem:[#allocation10 + $0xb8] sm:$0xff]  ;;  %v755_v39 = vld [vmem:[#allocation11 + $0x20] sm:$0xff] }
  0xd6   :  { %v340_v49 = vadd.f32 %v339_v46, %v317_v42  ;;  %865 = vmatpush.msrb.mxu2 %v774_v40  ;;  %885 = vmatpush.msrb.mxu3 %v812_v41  ;;  %v793_v40 = vld [vmem:[#allocation11 + $0x150] sm:$0xff]  ;;  %v708_v41 = vld [vmem:[#allocation10 + $0xa8] sm:$0xff]  ;;  %v746_v42 = vld [vmem:[#allocation10 + $0x1d8] sm:$0xff] }
  0xd7   :  { %838 = vmatpush.msrb.mxu1 %v813_v45  ;;  %818 = vmatpush.msrb.mxu0 %v775_v50  ;;  %v791_v45 = vld [vmem:[#allocation11 + $0x140] sm:$0xff]  ;;  %v706_v46 = vld [vmem:[#allocation10 + $0x98] sm:$0xff]  ;;  %v704_v50 = vld [vmem:[#allocation10 + $0x88] sm:$0xff] }
  0xd8   :  { %vm345_vm3 = vcmp.ge.f32.partialorder %v340_v49, 0.0  ;;  %v349_v54 = vmul.f32 0.01, %v340_v49  ;;  %866 = vmatpush.msrb.mxu2 %v772_v47  ;;  %886 = vmatpush.msrb.mxu3 %v810_v48  ;;  %v744_v47 = vld [vmem:[#allocation10 + $0x1c8] sm:$0xff]  ;;  %v751_v48 = vld [vmem:[#allocation11] sm:$0xff] }
  0xd9   :  { %839 = vmatpush.msrb.mxu1 %v811_v51  ;;  %819 = vmatpush.msrb.mxu0 %v773_v60  ;;  %v742_v51 = vld [vmem:[#allocation10 + $0x1b8] sm:$0xff] }
  0xda   :  { %v1612_v57 = vsel %vm345_vm3, %v340_v49, %v349_v54  ;;  %867 = vmatpush.msrb.mxu2 %v770_v52  ;;  %887 = vmatpush.msrb.mxu3 %v808_v53  ;;  %v789_v49 = vld [vmem:[#allocation11 + $0x130] sm:$0xff]  ;;  %v787_v53 = vld [vmem:[#allocation11 + $0x120] sm:$0xff]  ;;  %v702_v54 = vld [vmem:[#allocation10 + $0x78] sm:$0xff] }
  0xdb   :  { %524 = vmatmul.f32.gmra.mxu1 %v1612_v57  ;;  %570 = vmatmul.f32.gmra.mxu3 %v1612_v57  ;;  %v717_v52 = vld [vmem:[#allocation10 + $0xf0] sm:$0xff]  ;;  %v738_v60 = vld [vmem:[#allocation10 + $0x198] sm:$0xff] }
  0xdc   :  { %868 = vmatpush.msrb.mxu2 %v768_v55  ;;  %888 = vmatpush.msrb.mxu3 %v806_v56  ;;  %v740_v55 = vld [vmem:[#allocation10 + $0x1a8] sm:$0xff]  ;;  %v715_v56 = vld [vmem:[#allocation10 + $0xe0] sm:$0xff] }
  0xdd   :  { %590 = vmatmul.f32.vlgmr.msra.gmra.mxu0 %v1584_v62  ;;  %636 = vmatmul.f32.vlgmr.msra.gmra.mxu2 %v1584_v62  ;;  %v758_v62 = vld [vmem:[#allocation11 + $0x38] sm:$0xff] }
  0xde   :  { %869 = vmatpush.msrb.mxu2 %v766_v58  ;;  %889 = vmatpush.msrb.mxu3 %v804_v59  ;;  %v785_v58 = vld [vmem:[#allocation11 + $0x110] sm:$0xff]  ;;  %v700_v59 = vld [vmem:[#allocation10 + $0x68] sm:$0xff] }
  0xdf   :  { %840 = vmatpush.msrb.mxu1 %v809_v61  ;;  %820 = vmatpush.msrb.mxu0 %v771_v2  ;;  %v713_v61 = vld [vmem:[#allocation10 + $0xd0] sm:$0xff]  ;;  %v736_v2 = vld [vmem:[#allocation10 + $0x188] sm:$0xff] }
  0xe0   :  { %870 = vmatpush.msrb.mxu2 %v764_v63  ;;  %890 = vmatpush.msrb.mxu3 %v802_v0  ;;  %v783_v63 = vld [vmem:[#allocation11 + $0x100] sm:$0xff]  ;;  %v698_v0 = vld [vmem:[#allocation10 + $0x58] sm:$0xff] }
  0xe1   :  { %841 = vmatpush.msrb.mxu1 %v807_v3  ;;  %821 = vmatpush.msrb.mxu0 %v769_v9  ;;  %v711_v3 = vld [vmem:[#allocation10 + $0xc0] sm:$0xff]  ;;  %v732_v9 = vld [vmem:[#allocation10 + $0x168] sm:$0xff] }
  0xe2   :  { %871 = vmatpush.msrb.mxu2 %v762_v4  ;;  %891 = vmatpush.msrb.mxu3 %v800_v5  ;;  %v749_v4 = vld [vmem:[#allocation10 + $0x1f0] sm:$0xff]  ;;  %v696_v5 = vld [vmem:[#allocation10 + $0x48] sm:$0xff] }
  0xe3   :  { %613 = vmatmul.f32.vlgmr.msra.gmra.mxu1 %v1586_v1  ;;  %659 = vmatmul.f32.vlgmr.msra.gmra.mxu3 %v1586_v1  ;;  %v752_v1 = vld [vmem:[#allocation11 + $0x8] sm:$0xff] }
  0xe4   :  { %872 = vmatpush.msrb.mxu2 %v760_v6  ;;  %892 = vmatpush.msrb.mxu3 %v798_v7  ;;  %v734_v6 = vld [vmem:[#allocation10 + $0x178] sm:$0xff]  ;;  %v709_v7 = vld [vmem:[#allocation10 + $0xb0] sm:$0xff] }
  0xe5   :  { %593 = vmatmul.f32.gmra.mxu0 %v1592_v12  ;;  %639 = vmatmul.f32.gmra.mxu2 %v1592_v12  ;;  %v765_v12 = vld [vmem:[#allocation11 + $0x70] sm:$0xff] }
  0xe6   :  { %873 = vmatpush.msrb.mxu2 %v758_v62  ;;  %893 = vmatpush.msrb.mxu3 %v796_v8  ;;  %v747_v62 = vld [vmem:[#allocation10 + $0x1e0] sm:$0xff]  ;;  %v694_v8 = vld [vmem:[#allocation10 + $0x38] sm:$0xff] }
  0xe7   :  { %842 = vmatpush.msrb.mxu1 %v805_v10  ;;  %822 = vmatpush.msrb.mxu0 %v767_v14  ;;  %v707_v10 = vld [vmem:[#allocation10 + $0xa0] sm:$0xff]  ;;  %v730_v14 = vld [vmem:[#allocation10 + $0x158] sm:$0xff] }
  0xe8   :  { %874 = vmatpush.msrb.mxu2 %v756_v11  ;;  %894 = vmatpush.msrb.mxu3 %v794_v13  ;;  %v745_v11 = vld [vmem:[#allocation10 + $0x1d0] sm:$0xff]  ;;  %v692_v13 = vld [vmem:[#allocation10 + $0x28] sm:$0xff] }
  0xe9   :  { %823 = vmatpush.msrb.mxu0 %v765_v12  ;;  %843 = vmatpush.msrb.mxu1 %v803_v19  ;;  %v703_v12 = vld [vmem:[#allocation10 + $0x80] sm:$0xff]  ;;  %v741_v19 = vld [vmem:[#allocation10 + $0x1b0] sm:$0xff] }
  0xea   :  { %875 = vmatpush.msrb.mxu2 %v754_v16  ;;  %895 = vmatpush.msrb.mxu3 %v792_v17  ;;  %v705_v16 = vld [vmem:[#allocation10 + $0x90] sm:$0xff]  ;;  %v743_v17 = vld [vmem:[#allocation10 + $0x1c0] sm:$0xff] }
  0xeb   :  { %616 = vmatmul.f32.gmra.mxu1 %v1594_v15  ;;  %662 = vmatmul.f32.gmra.mxu3 %v1594_v15  ;;  %v784_v15 = vld [vmem:[#allocation11 + $0x108] sm:$0xff] }
  0xec   :  { %876 = vmatpush.msrb.mxu2 %v752_v1  ;;  %896 = vmatpush.msrb.mxu3 %v790_v18  ;;  %v690_v1 = vld [vmem:[#allocation10 + $0x18] sm:$0xff]  ;;  %v728_v18 = vld [vmem:[#allocation10 + $0x148] sm:$0xff] }
  0xed   :  { %824 = vmatpush.msrb.mxu0 %v763_v22  ;;  %844 = vmatpush.msrb.mxu1 %v801_v24  ;;  %v701_v22 = vld [vmem:[#allocation10 + $0x70] sm:$0xff]  ;;  %v739_v24 = vld [vmem:[#allocation10 + $0x1a0] sm:$0xff] }
  0xee   :  { %953 = vmatpush.msra.mxu2 %v718_v20  ;;  %897 = vmatpush.msrb.mxu3 %v788_v21  ;;  %v688_v20 = vld [vmem:[#allocation10 + $0x8] sm:$0xff]  ;;  %v726_v21 = vld [vmem:[#allocation10 + $0x138] sm:$0xff] }
  0xef   :  { %825 = vmatpush.msrb.mxu0 %v761_v27  ;;  %845 = vmatpush.msrb.mxu1 %v799_v28  ;;  %v699_v27 = vld [vmem:[#allocation10 + $0x60] sm:$0xff]  ;;  %v737_v28 = vld [vmem:[#allocation10 + $0x190] sm:$0xff] }
  0xf0   :  { %954 = vmatpush.msra.mxu2 %v716_v25  ;;  %898 = vmatpush.msrb.mxu3 %v786_v26  ;;  %v724_v25 = vld [vmem:[#allocation10 + $0x128] sm:$0xff] }
  0xf1   :  { %826 = vmatpush.msrb.mxu0 %v759_v30  ;;  %846 = vmatpush.msrb.mxu1 %v797_v31  ;;  %v735_v30 = vld [vmem:[#allocation10 + $0x180] sm:$0xff]  ;;  %v720_v31 = vld [vmem:[#allocation10 + $0x108] sm:$0xff] }
  0xf2   :  { %955 = vmatpush.msra.mxu2 %v714_v29  ;;  %899 = vmatpush.msrb.mxu3 %v784_v15  ;;  %v722_v29 = vld [vmem:[#allocation10 + $0x118] sm:$0xff]  ;;  %v697_v15 = vld [vmem:[#allocation10 + $0x50] sm:$0xff] }
  0xf3   :  { %827 = vmatpush.msrb.mxu0 %v757_v34  ;;  %847 = vmatpush.msrb.mxu1 %v795_v35 }
  0xf4   :  { %956 = vmatpush.msra.mxu2 %v712_v32  ;;  %976 = vmatpush.msra.mxu3 %v750_v33  ;;  %v695_v32 = vld [vmem:[#allocation10 + $0x40] sm:$0xff]  ;;  %v733_v33 = vld [vmem:[#allocation10 + $0x170] sm:$0xff] }
  0xf5   :  { %828 = vmatpush.msrb.mxu0 %v755_v39  ;;  %848 = vmatpush.msrb.mxu1 %v793_v40  ;;  %v691_v39 = vld [vmem:[#allocation10 + $0x20] sm:$0xff]  ;;  %v729_v40 = vld [vmem:[#allocation10 + $0x150] sm:$0xff] }
  0xf6   :  { %957 = vmatpush.msra.mxu2 %v710_v36  ;;  %977 = vmatpush.msra.mxu3 %v748_v37  ;;  %v693_v36 = vld [vmem:[#allocation10 + $0x30] sm:$0xff]  ;;  %v731_v37 = vld [vmem:[#allocation10 + $0x160] sm:$0xff] }
  0xf7   :  { %829 = vmatpush.msrb.mxu0 %v753_v44  ;;  %849 = vmatpush.msrb.mxu1 %v791_v45  ;;  %v727_v44 = vld [vmem:[#allocation10 + $0x140] sm:$0xff] }
  0xf8   :  { %958 = vmatpush.msra.mxu2 %v708_v41  ;;  %978 = vmatpush.msra.mxu3 %v746_v42  ;;  %v689_v42 = vld [vmem:[#allocation10 + $0x10] sm:$0xff] }
  0xf9   :  { %830 = vmatpush.msrb.mxu0 %v751_v48  ;;  %850 = vmatpush.msrb.mxu1 %v789_v49 }
  0xfa   :  { %959 = vmatpush.msra.mxu2 %v706_v46  ;;  %979 = vmatpush.msra.mxu3 %v744_v47  ;;  %v687_v46 = vld [vmem:[#allocation10] sm:$0xff]  ;;  %v725_v47 = vld [vmem:[#allocation10 + $0x130] sm:$0xff] }
  0xfb   :  { %907 = vmatpush.msra.mxu0 %v717_v52  ;;  %851 = vmatpush.msrb.mxu1 %v787_v53  ;;  %v719_v53 = vld [vmem:[#allocation10 + $0x100] sm:$0xff] }
  0xfc   :  { %960 = vmatpush.msra.mxu2 %v704_v50  ;;  %980 = vmatpush.msra.mxu3 %v742_v51  ;;  %v723_v50 = vld [vmem:[#allocation10 + $0x120] sm:$0xff]  ;;  %v721_v51 = vld [vmem:[#allocation10 + $0x110] sm:$0xff] }
  0xfd   :  { %908 = vmatpush.msra.mxu0 %v715_v56  ;;  %852 = vmatpush.msrb.mxu1 %v785_v58 }
  0xfe   :  { %961 = vmatpush.msra.mxu2 %v702_v54  ;;  %981 = vmatpush.msra.mxu3 %v740_v55  ;;  %v173_v54 = vld [vmem:[#allocation16 + $0x1] ss:$8 sm:$0x3] }
  0xff   :  { %909 = vmatpush.msra.mxu0 %v713_v61  ;;  %853 = vmatpush.msrb.mxu1 %v783_v63 }
 0x100   :  { %962 = vmatpush.msra.mxu2 %v700_v59  ;;  %982 = vmatpush.msra.mxu3 %v738_v60  ;;  %v667_v59 = vperm.slane %v173_v54, 0 }
 0x101   :  { %910 = vmatpush.msra.mxu0 %v711_v3  ;;  %930 = vmatpush.msra.mxu1 %v749_v4  ;;  %v668_v4 = vperm.slane %v173_v54, 1  ;;  %v1021_v54 = vld [vmem:[#allocation13 + $0x8] sm:$0xff] }
 0x102   :  { %963 = vmatpush.msra.mxu2 %v698_v0  ;;  %983 = vmatpush.msra.mxu3 %v736_v2 }
 0x103   :  { %911 = vmatpush.msra.mxu0 %v709_v7  ;;  %931 = vmatpush.msra.mxu1 %v747_v62 }
 0x104   :  { %964 = vmatpush.msra.mxu2 %v696_v5  ;;  %984 = vmatpush.msra.mxu3 %v734_v6 }
 0x105   :  { %912 = vmatpush.msra.mxu0 %v707_v10  ;;  %932 = vmatpush.msra.mxu1 %v745_v11 }
 0x106   :  { %965 = vmatpush.msra.mxu2 %v694_v8  ;;  %985 = vmatpush.msra.mxu3 %v732_v9  ;;  %v1035_v8 = vld [vmem:[#allocation13 + $0x78] sm:$0xff] }
 0x107   :  { %913 = vmatpush.msra.mxu0 %v705_v16  ;;  %933 = vmatpush.msra.mxu1 %v743_v17 }
 0x108   :  { %966 = vmatpush.msra.mxu2 %v692_v13  ;;  %986 = vmatpush.msra.mxu3 %v730_v14  ;;  %v1034_v14 = vld [vmem:[#allocation13 + $0x70] sm:$0xff] }
 0x109   :  { %914 = vmatpush.msra.mxu0 %v703_v12  ;;  %934 = vmatpush.msra.mxu1 %v741_v19 }
 0x10a   :  { %967 = vmatpush.msra.mxu2 %v690_v1  ;;  %987 = vmatpush.msra.mxu3 %v728_v18  ;;  %v1033_v18 = vld [vmem:[#allocation13 + $0x68] sm:$0xff] }
 0x10b   :  { %915 = vmatpush.msra.mxu0 %v701_v22  ;;  %935 = vmatpush.msra.mxu1 %v739_v24  ;;  %v1051_v22 = vld [vmem:[#allocation13 + $0xf8] sm:$0xff] }
 0x10c   :  { %968 = vmatpush.msra.mxu2 %v688_v20  ;;  %988 = vmatpush.msra.mxu3 %v726_v21  ;;  %v1032_v21 = vld [vmem:[#allocation13 + $0x60] sm:$0xff] }
 0x10d   :  { %916 = vmatpush.msra.mxu0 %v699_v27  ;;  %936 = vmatpush.msra.mxu1 %v737_v28  ;;  %v1031_v28 = vld [vmem:[#allocation13 + $0x58] sm:$0xff] }
 0x10e   :  { %989 = vmatpush.msra.mxu3 %v724_v25 }
 0x10f   :  { %917 = vmatpush.msra.mxu0 %v697_v15  ;;  %937 = vmatpush.msra.mxu1 %v735_v30 }
 0x110   :  { %990 = vmatpush.msra.mxu3 %v722_v29  ;;  %v1050_v29 = vld [vmem:[#allocation13 + $0xf0] sm:$0xff] }
 0x111   :  { %918 = vmatpush.msra.mxu0 %v695_v32  ;;  %938 = vmatpush.msra.mxu1 %v733_v33  ;;  %v1049_v32 = vld [vmem:[#allocation13 + $0xe8] sm:$0xff] }
 0x112   :  { %991 = vmatpush.msra.mxu3 %v720_v31  ;;  %v1030_v31 = vld [vmem:[#allocation13 + $0x50] sm:$0xff] }
 0x113   :  { %919 = vmatpush.msra.mxu0 %v693_v36  ;;  %939 = vmatpush.msra.mxu1 %v731_v37  ;;  %v1028_v37 = vld [vmem:[#allocation13 + $0x40] sm:$0xff] }
 0x115   :  { %920 = vmatpush.msra.mxu0 %v691_v39  ;;  %940 = vmatpush.msra.mxu1 %v729_v40  ;;  %v1047_v39 = vld [vmem:[#allocation13 + $0xd8] sm:$0xff] }
 0x117   :  { %921 = vmatpush.msra.mxu0 %v689_v42  ;;  %941 = vmatpush.msra.mxu1 %v727_v44  ;;  %v1046_v42 = vld [vmem:[#allocation13 + $0xd0] sm:$0xff]  ;;  %v1067_v44 = vld [vmem:[#allocation14 + $0x78] sm:$0xff] }
 0x119   :  { %922 = vmatpush.msra.mxu0 %v687_v46  ;;  %942 = vmatpush.msra.mxu1 %v725_v47  ;;  %v1045_v46 = vld [vmem:[#allocation13 + $0xc8] sm:$0xff] }
 0x11a   :  { %v1025_v47 = vld [vmem:[#allocation13 + $0x28] sm:$0xff] }
 0x11b   :  { %943 = vmatpush.msra.mxu1 %v723_v50  ;;  %v1043_v50 = vld [vmem:[#allocation13 + $0xb8] sm:$0xff] }
 0x11d   :  { %944 = vmatpush.msra.mxu1 %v721_v51  ;;  %v1023_v51 = vld [vmem:[#allocation13 + $0x18] sm:$0xff] }
 0x11f   :  { %945 = vmatpush.msra.mxu1 %v719_v53  ;;  %v1041_v53 = vld [vmem:[#allocation13 + $0xa8] sm:$0xff] }
 0x149   :  { %v499_v26 = vpop.f32.mrf.mxu0 }
 0x14f   :  { %v545_v35 = vpop.f32.mrf.mxu2 }
 0x150   :  { %v522_v34 = vpop.f32.mrf.mxu1 }
 0x151   :  { %v523_v55 = vadd.f32 %v522_v34, %v499_v26  ;;  %v1029_v34 = vld [vmem:[#allocation13 + $0x48] sm:$0xff] }
 0x152   :  { %v502_v41 = vpop.f32.mrf.mxu0 }
 0x156   :  { %v568_v45 = vpop.f32.mrf.mxu3 }
 0x157   :  { %v569_v0 = vadd.f32 %v568_v45, %v545_v35  ;;  %v1048_v35 = vld [vmem:[#allocation13 + $0xe0] sm:$0xff]  ;;  %v1026_v45 = vld [vmem:[#allocation13 + $0x30] sm:$0xff] }
 0x158   :  { %v525_v48 = vpop.f32.mrf.mxu1  ;;  %v548_v49 = vpop.f32.mrf.mxu2 }
 0x159   :  { %v526_v5 = vadd.f32 %v525_v48, %v502_v41  ;;  %v1027_v41 = vld [vmem:[#allocation13 + $0x38] sm:$0xff]  ;;  %v1044_v48 = vld [vmem:[#allocation13 + $0xc0] sm:$0xff] }
 0x15a   :  { %v591_v52 = vpop.f32.mrf.mxu0 }
 0x15b   :  { %v592_v58 = vadd.f32 %v591_v52, %v523_v55  ;;  %v1042_v52 = vld [vmem:[#allocation13 + $0xb0] sm:$0xff]  ;;  %v1040_v55 = vld [vmem:[#allocation13 + $0xa0] sm:$0xff] }
 0x15e   :  { %v571_v56 = vpop.f32.mrf.mxu3 }
 0x15f   :  { %v572_v12 = vadd.f32 %v571_v56, %v548_v49  ;;  %v1024_v49 = vld [vmem:[#allocation13 + $0x20] sm:$0xff] }
 0x160   :  { %v614_v60 = vpop.f32.mrf.mxu1  ;;  %v637_v61 = vpop.f32.mrf.mxu2  ;;  %v1020_v56 = vld [vmem:[#allocation13] sm:$0xff] }
 0x161   :  { %v615_v63 = vadd.f32 %v614_v60, %v592_v58  ;;  %v638_v7 = vadd.f32 %v637_v61, %v569_v0  ;;  %v1039_v58 = vld [vmem:[#allocation13 + $0x98] sm:$0xff]  ;;  %v1066_v60 = vld [vmem:[#allocation14 + $0x70] sm:$0xff]  ;;  %v1065_v61 = vld [vmem:[#allocation14 + $0x68] sm:$0xff] }
 0x162   :  { %v594_v3 = vpop.f32.mrf.mxu0  ;;  %v1063_v0 = vld [vmem:[#allocation14 + $0x58] sm:$0xff] }
 0x163   :  { %v671_v2 = vadd.f32 %v667_v59, %v615_v63  ;;  %v595_v9 = vadd.f32 %v594_v3, %v526_v5  ;;  %v1083_v63 = vld [vmem:[#allocation14 + $0xf8] sm:$0xff]  ;;  %v1062_v3 = vld [vmem:[#allocation14 + $0x50] sm:$0xff]  ;;  %v1061_v5 = vld [vmem:[#allocation14 + $0x48] sm:$0xff] }
 0x165   :  { %v679_v6 = vmul.f32 0.01, %v671_v2  ;;  %vm675_vm4 = vcmp.ge.f32.partialorder %v671_v2, 0.0 }
 0x166   :  { %v660_v62 = vpop.f32.mrf.mxu3 }
 0x167   :  { %v661_v10 = vadd.f32 %v660_v62, %v638_v7  ;;  %v1624_v11 = vsel %vm675_vm4, %v671_v2, %v679_v6  ;;  %v1082_v2 = vld [vmem:[#allocation14 + $0xf0] sm:$0xff]  ;;  %v1080_v6 = vld [vmem:[#allocation14 + $0xe0] sm:$0xff]  ;;  %v1079_v62 = vld [vmem:[#allocation14 + $0xd8] sm:$0xff] }
 0x168   :  { %v617_v13 = vpop.f32.mrf.mxu1  ;;  %831 = vmatmul.f32.vlgmr.msrb.gmra.mxu0 %v1624_v11  ;;  %877 = vmatmul.f32.vlgmr.msrb.gmra.mxu2 %v1624_v11  ;;  %v640_v1 = vpop.f32.mrf.mxu2  ;;  %v1060_v7 = vld [vmem:[#allocation14 + $0x40] sm:$0xff] }
 0x169   :  { %v672_v16 = vadd.f32 %v668_v4, %v661_v10  ;;  %v618_v17 = vadd.f32 %v617_v13, %v595_v9  ;;  %1130 = vmatpush.msrb.mxu2 %v1035_v8  ;;  %v641_v24 = vadd.f32 %v640_v1, %v572_v12  ;;  %1084 = vmatpush.msrb.mxu0 %v1067_v44  ;;  %v1059_v8 = vld [vmem:[#allocation14 + $0x38] sm:$0xff]  ;;  %v1078_v9 = vld [vmem:[#allocation14 + $0xd0] sm:$0xff]  ;;  %v1057_v13 = vld [vmem:[#allocation14 + $0x28] sm:$0xff] }
 0x16a   :  { %v1058_v10 = vld [vmem:[#allocation14 + $0x30] sm:$0xff]  ;;  %v1055_v1 = vld [vmem:[#allocation14 + $0x18] sm:$0xff] }
 0x16b   :  { %v680_v19 = vmul.f32 0.01, %v672_v16  ;;  %v673_v20 = vadd.f32 %v667_v59, %v618_v17  ;;  %1131 = vmatpush.msrb.mxu2 %v1034_v14  ;;  %vm676_vm5 = vcmp.ge.f32.partialorder %v672_v16, 0.0  ;;  %v1036_v59 = vld [vmem:[#allocation13 + $0x80] sm:$0xff]  ;;  %1085 = vmatpush.msrb.mxu0 %v1066_v60  ;;  %v1075_v17 = vld [vmem:[#allocation14 + $0xb8] sm:$0xff]  ;;  %v1054_v12 = vld [vmem:[#allocation14 + $0x10] sm:$0xff] }
 0x16c   :  { %v1076_v14 = vld [vmem:[#allocation14 + $0xc0] sm:$0xff] }
 0x16d   :  { %1132 = vmatpush.msrb.mxu2 %v1033_v18  ;;  %v1628_v25 = vsel %vm676_vm5, %v672_v16, %v680_v19  ;;  %vm677_vm6 = vcmp.ge.f32.partialorder %v673_v20, 0.0  ;;  %v681_v26 = vmul.f32 0.01, %v673_v20  ;;  %1086 = vmatpush.msrb.mxu0 %v1065_v61  ;;  %v1056_v16 = vld [vmem:[#allocation14 + $0x20] sm:$0xff]  ;;  %v1074_v18 = vld [vmem:[#allocation14 + $0xb0] sm:$0xff]  ;;  %v1073_v19 = vld [vmem:[#allocation14 + $0xa8] sm:$0xff] }
 0x16e   :  { %v663_v27 = vpop.f32.mrf.mxu3  ;;  %854 = vmatmul.f32.vlgmr.msrb.gmra.mxu1 %v1628_v25  ;;  %900 = vmatmul.f32.vlgmr.msrb.gmra.mxu3 %v1628_v25 }
 0x16f   :  { %v664_v15 = vadd.f32 %v663_v27, %v641_v24  ;;  %1133 = vmatpush.msrb.mxu2 %v1032_v21  ;;  %1153 = vmatpush.msrb.mxu3 %v1051_v22  ;;  %v1632_v30 = vsel %vm677_vm6, %v673_v20, %v681_v26  ;;  %v1053_v20 = vld [vmem:[#allocation14 + $0x8] sm:$0xff]  ;;  %v1072_v21 = vld [vmem:[#allocation14 + $0xa0] sm:$0xff]  ;;  %v1071_v24 = vld [vmem:[#allocation14 + $0x98] sm:$0xff] }
 0x170   :  { %834 = vmatmul.f32.gmra.mxu0 %v1632_v30  ;;  %880 = vmatmul.f32.gmra.mxu2 %v1632_v30  ;;  %v1052_v22 = vld [vmem:[#allocation14] sm:$0xff]  ;;  %v1069_v27 = vld [vmem:[#allocation14 + $0x88] sm:$0xff] }
 0x171   :  { %v674_v33 = vadd.f32 %v668_v4, %v664_v15  ;;  %1134 = vmatpush.msrb.mxu2 %v1031_v28  ;;  %1154 = vmatpush.msrb.mxu3 %v1050_v29  ;;  %v1081_v4 = vld [vmem:[#allocation14 + $0xe8] sm:$0xff]  ;;  %v1068_v28 = vld [vmem:[#allocation14 + $0x80] sm:$0xff] }
 0x172   :  { %1107 = vmatpush.msrb.mxu1 %v1083_v63 }
 0x173   :  { %1135 = vmatpush.msrb.mxu2 %v1030_v31  ;;  %1155 = vmatpush.msrb.mxu3 %v1049_v32  ;;  %vm678_vm7 = vcmp.ge.f32.partialorder %v674_v33, 0.0  ;;  %v682_v36 = vmul.f32 0.01, %v674_v33 }
 0x174   :  { %1108 = vmatpush.msrb.mxu1 %v1082_v2 }
 0x175   :  { %1136 = vmatpush.msrb.mxu2 %v1029_v34  ;;  %1156 = vmatpush.msrb.mxu3 %v1048_v35  ;;  %v686_v40 = vsel %vm678_vm7, %v674_v33, %v682_v36  ;;  %v175_v35 = vld [vmem:[#allocation16 + $0x2] ss:$8 sm:$0x3] }
 0x176   :  { %857 = vmatmul.f32.gmra.mxu1 %v686_v40  ;;  %903 = vmatmul.f32.gmra.mxu3 %v686_v40 }
 0x177   :  { %1137 = vmatpush.msrb.mxu2 %v1028_v37  ;;  %1157 = vmatpush.msrb.mxu3 %v1047_v39 }
 0x178   :  { %923 = vmatmul.f32.vlgmr.msra.gmra.mxu0 %v1600_v23  ;;  %969 = vmatmul.f32.vlgmr.msra.gmra.mxu2 %v1600_v23  ;;  %v1022_v23 = vld [vmem:[#allocation13 + $0x10] sm:$0xff] }
 0x179   :  { %1138 = vmatpush.msrb.mxu2 %v1027_v41  ;;  %1158 = vmatpush.msrb.mxu3 %v1046_v42 }
 0x17a   :  { %1109 = vmatpush.msrb.mxu1 %v1081_v4 }
 0x17b   :  { %1139 = vmatpush.msrb.mxu2 %v1026_v45  ;;  %1159 = vmatpush.msrb.mxu3 %v1045_v46 }
 0x17c   :  { %1110 = vmatpush.msrb.mxu1 %v1080_v6 }
 0x17d   :  { %1140 = vmatpush.msrb.mxu2 %v1025_v47  ;;  %1160 = vmatpush.msrb.mxu3 %v1044_v48  ;;  %v1001_v48 = vperm.slane %v175_v35, 1 }
 0x17e   :  { %946 = vmatmul.f32.vlgmr.msra.gmra.mxu1 %v1604_v38  ;;  %992 = vmatmul.f32.vlgmr.msra.gmra.mxu3 %v1604_v38  ;;  %v1038_v38 = vld [vmem:[#allocation13 + $0x90] sm:$0xff] }
 0x17f   :  { %1141 = vmatpush.msrb.mxu2 %v1024_v49  ;;  %1161 = vmatpush.msrb.mxu3 %v1043_v50 }
 0x180   :  { %926 = vmatmul.f32.gmra.mxu0 %v1608_v43  ;;  %972 = vmatmul.f32.gmra.mxu2 %v1608_v43  ;;  %v1037_v43 = vld [vmem:[#allocation13 + $0x88] sm:$0xff] }
 0x181   :  { %1142 = vmatpush.msrb.mxu2 %v1023_v51  ;;  %1162 = vmatpush.msrb.mxu3 %v1042_v52 }
 0x182   :  { %1111 = vmatpush.msrb.mxu1 %v1079_v62 }
 0x183   :  { %1143 = vmatpush.msrb.mxu2 %v1022_v23  ;;  %1163 = vmatpush.msrb.mxu3 %v1041_v53 }
 0x184   :  { %1112 = vmatpush.msrb.mxu1 %v1078_v9 }
 0x185   :  { %1144 = vmatpush.msrb.mxu2 %v1021_v54  ;;  %1164 = vmatpush.msrb.mxu3 %v1040_v55 }
 0x186   :  { %949 = vmatmul.f32.gmra.mxu1 %v1612_v57  ;;  %995 = vmatmul.f32.gmra.mxu3 %v1612_v57  ;;  %v1064_v57 = vld [vmem:[#allocation14 + $0x60] sm:$0xff] }
 0x187   :  { %1145 = vmatpush.msrb.mxu2 %v1020_v56  ;;  %1165 = vmatpush.msrb.mxu3 %v1039_v58 }
 0x188   :  { %1146 = vmatmul.f32.vlgmr.msrb.gmra.mxu2 %v1624_v11  ;;  %1087 = vmatpush.msrb.mxu0 %v1064_v57  ;;  %v1077_v11 = vld [vmem:[#allocation14 + $0xc8] sm:$0xff] }
 0x189   :  { %1166 = vmatpush.msrb.mxu3 %v1038_v38  ;;  %1113 = vmatpush.msrb.mxu1 %v1077_v11 }
 0x18a   :  { %1088 = vmatpush.msrb.mxu0 %v1063_v0 }
 0x18b   :  { %1167 = vmatpush.msrb.mxu3 %v1037_v43  ;;  %1114 = vmatpush.msrb.mxu1 %v1076_v14 }
 0x18c   :  { %1089 = vmatpush.msrb.mxu0 %v1062_v3 }
 0x18d   :  { %1168 = vmatpush.msrb.mxu3 %v1036_v59  ;;  %1115 = vmatpush.msrb.mxu1 %v1075_v17 }
 0x18e   :  { %1169 = vmatmul.f32.vlgmr.msrb.gmra.mxu3 %v1628_v25  ;;  %1090 = vmatpush.msrb.mxu0 %v1061_v5  ;;  %v1070_v25 = vld [vmem:[#allocation14 + $0x90] sm:$0xff] }
 0x18f   :  { %1116 = vmatpush.msrb.mxu1 %v1074_v18 }
 0x190   :  { %1149 = vmatmul.f32.gmra.mxu2 %v1632_v30  ;;  %1091 = vmatpush.msrb.mxu0 %v1060_v7 }
 0x191   :  { %1117 = vmatpush.msrb.mxu1 %v1073_v19 }
 0x192   :  { %1092 = vmatpush.msrb.mxu0 %v1059_v8 }
 0x193   :  { %1118 = vmatpush.msrb.mxu1 %v1072_v21 }
 0x194   :  { %1093 = vmatpush.msrb.mxu0 %v1058_v10 }
 0x195   :  { %1119 = vmatpush.msrb.mxu1 %v1071_v24 }
 0x196   :  { %1172 = vmatmul.f32.gmra.mxu3 %v686_v40  ;;  %1094 = vmatpush.msrb.mxu0 %v1057_v13  ;;  %v1000_v40 = vperm.slane %v175_v35, 0  ;;  %v176_v13 = vld [vmem:[#allocation16 + $0x3] ss:$0 sm:$0xff] }
 0x197   :  { %1120 = vmatpush.msrb.mxu1 %v1070_v25 }
 0x198   :  { %1095 = vmatpush.msrb.mxu0 %v1056_v16 }
 0x199   :  { %1121 = vmatpush.msrb.mxu1 %v1069_v27 }
 0x19a   :  { %1096 = vmatpush.msrb.mxu0 %v1055_v1 }
 0x19b   :  { %1122 = vmatpush.msrb.mxu1 %v1068_v28 }
 0x19c   :  { %1097 = vmatpush.msrb.mxu0 %v1054_v12 }
 0x19e   :  { %1098 = vmatpush.msrb.mxu0 %v1053_v20 }
 0x1a0   :  { %1099 = vmatpush.msrb.mxu0 %v1052_v22 }
 0x1e5   :  { %v832_v26 = vpop.f32.mrf.mxu0 }
 0x1eb   :  { %v855_v29 = vpop.f32.mrf.mxu1  ;;  %v878_v15 = vpop.f32.mrf.mxu2 }
 0x1ec   :  { %v856_v36 = vadd.f32 %v855_v29, %v832_v26 }
 0x1ed   :  { %v835_v30 = vpop.f32.mrf.mxu0 }
 0x1f1   :  { %v901_v31 = vpop.f32.mrf.mxu3 }
 0x1f2   :  { %v902_v45 = vadd.f32 %v901_v31, %v878_v15 }
 0x1f3   :  { %v858_v32 = vpop.f32.mrf.mxu1  ;;  %v881_v33 = vpop.f32.mrf.mxu2 }
 0x1f4   :  { %v859_v49 = vadd.f32 %v858_v32, %v835_v30 }
 0x1f5   :  { %v924_v34 = vpop.f32.mrf.mxu0 }
 0x1f6   :  { %v925_v39 = vadd.f32 %v924_v34, %v856_v36 }
 0x1f9   :  { %v904_v37 = vpop.f32.mrf.mxu3 }
 0x1fa   :  { %v905_v43 = vadd.f32 %v904_v37, %v881_v33 }
 0x1fb   :  { %v947_v41 = vpop.f32.mrf.mxu1  ;;  %v970_v42 = vpop.f32.mrf.mxu2 }
 0x1fc   :  { %v948_v44 = vadd.f32 %v947_v41, %v925_v39  ;;  %v971_v51 = vadd.f32 %v970_v42, %v902_v45 }
 0x1fd   :  { %v927_v47 = vpop.f32.mrf.mxu0 }
 0x1fe   :  { %v1004_v46 = vadd.f32 %v1000_v40, %v948_v44  ;;  %v928_v23 = vadd.f32 %v927_v47, %v859_v49 }
 0x200   :  { %v1012_v50 = vmul.f32 0.01, %v1004_v46  ;;  %vm1008_vm8 = vcmp.ge.f32.partialorder %v1004_v46, 0.0 }
 0x201   :  { %v993_v52 = vpop.f32.mrf.mxu3 }
 0x202   :  { %v994_v53 = vadd.f32 %v993_v52, %v971_v51  ;;  %v1016_v54 = vsel %vm1008_vm8, %v1004_v46, %v1012_v50 }
 0x203   :  { %v950_v55 = vpop.f32.mrf.mxu1  ;;  %1100 = vmatmul.f32.vlgmr.msrb.gmra.mxu0 %v1016_v54  ;;  %v973_v38 = vpop.f32.mrf.mxu2 }
 0x204   :  { %v1005_v56 = vadd.f32 %v1001_v48, %v994_v53  ;;  %v951_v58 = vadd.f32 %v950_v55, %v928_v23  ;;  %v974_v61 = vadd.f32 %v973_v38, %v905_v43 }
 0x206   :  { %v1013_v59 = vmul.f32 0.01, %v1005_v56  ;;  %v1006_v60 = vadd.f32 %v1000_v40, %v951_v58  ;;  %vm1009_vm9 = vcmp.ge.f32.partialorder %v1005_v56, 0.0 }
 0x208   :  { %v1017_v63 = vsel %vm1009_vm9, %v1005_v56, %v1013_v59  ;;  %vm1010_vm10 = vcmp.ge.f32.partialorder %v1006_v60, 0.0  ;;  %v1014_v57 = vmul.f32 0.01, %v1006_v60 }
 0x209   :  { %v996_v0 = vpop.f32.mrf.mxu3  ;;  %1123 = vmatmul.f32.vlgmr.msrb.gmra.mxu1 %v1017_v63 }
 0x20a   :  { %v997_v2 = vadd.f32 %v996_v0, %v974_v61  ;;  %v1018_v3 = vsel %vm1010_vm10, %v1006_v60, %v1014_v57 }
 0x20b   :  { %1103 = vmatmul.f32.gmra.mxu0 %v1018_v3  ;;  %v1147_v62 = vpop.f32.mrf.mxu2 }
 0x20c   :  { %v1007_v4 = vadd.f32 %v1001_v48, %v997_v2 }
 0x20e   :  { %vm1011_vm11 = vcmp.ge.f32.partialorder %v1007_v4, 0.0  ;;  %v1015_v5 = vmul.f32 0.01, %v1007_v4 }
 0x210   :  { %v1019_v6 = vsel %vm1011_vm11, %v1007_v4, %v1015_v5 }
 0x211   :  { %1126 = vmatmul.f32.gmra.mxu1 %v1019_v6  ;;  %v1170_v10 = vpop.f32.mrf.mxu3 }
 0x213   :  { %v1150_v12 = vpop.f32.mrf.mxu2 }
 0x219   :  { %v1173_v20 = vpop.f32.mrf.mxu3 }
 0x280   :  { %v1101_v7 = vpop.f32.mrf.mxu0 }
 0x286   :  { %v1124_v8 = vpop.f32.mrf.mxu1 }
 0x287   :  { %v1125_v9 = vadd.f32 %v1124_v8, %v1101_v7 }
 0x288   :  { %v1104_v17 = vpop.f32.mrf.mxu0 }
 0x289   :  { %v1148_v11 = vadd.f32 %v1147_v62, %v1125_v9 }
 0x28b   :  { %v1171_v14 = vadd.f32 %v1170_v10, %v1148_v11 }
 0x28d   :  { %v1176_v16 = vadd.f32 %v1171_v14, %v176_v13 }
 0x28e   :  { %v1127_v1 = vpop.f32.mrf.mxu1 }
 0x28f   :  { %1178 = vst [vmem:[#allocation17] sm:$0xff] %v1176_v16  ;;  %v1128_v18 = vadd.f32 %v1127_v1, %v1104_v17 }
 0x291   :  { %v1151_v19 = vadd.f32 %v1150_v12, %v1128_v18 }
 0x293   :  { %v1174_v21 = vadd.f32 %v1173_v20, %v1151_v19 }
 0x295   :  { %v1177_v22 = vadd.f32 %v1174_v21, %v176_v13 }
 0x297   :  { %1179 = vst [vmem:[#allocation17 + $0x8] sm:$0xff] %v1177_v22 }
 0x298   :  { %1192 = dma.vmem_to_hbm [thread:$0]  %s1185_s17, 256, %s1187_s29, [#allocation4], %s1475_s10, %s1475_s10, %s1476_s11  }
 0x299   :  { %1467 = dma.done.wait [#allocation4], 256  }
 0x29a   :  { %1468 = vsyncadd [#allocation4], 4294967040 }
 0x29b   :  { %1197 = vsyncpa [#allocation3], 1 }
 0x29c   :  { %1198 = vsyncpa [#allocation6], 1 }
 0x29d   :  { %1199 = vsyncpa [#allocation9], 1 }
 0x29e   :  { %1200 = vsyncpa [#allocation12], 1 }
 0x29f   :  { %1201 = vsyncpa [#allocation15], 1 }
 0x2a0   :  { %1202 = vsyncpa [#allocation4], 1 }

</bundles_post_ra>
